<compile_context>
chip_gen: v7x
topology: tpu7x:2x2x1
jax: 0.10.0
libtpu: 0.0.40
codegen_flags: <defaults>
</compile_context>

<pallas_src>
import functools

import jax
import jax.numpy as jnp
from jax import lax
from jax.experimental import pallas as pl
from jax.experimental.pallas import tpu as pltpu

_LN_EPS = 1e-5
_INV_SQRT2 = 0.7071067811865476


def _layer_norm_f32(y, g, b, eps=_LN_EPS):
    mu = jnp.mean(y, axis=-1, keepdims=True)
    var = jnp.mean(jnp.square(y - mu), axis=-1, keepdims=True)
    return (y - mu) * lax.rsqrt(var + eps) * g + b


# ---------------------------------------------------------------------------
# Transformer layer: PreNorm-MSA + residual, PreNorm-FFN + residual
# ---------------------------------------------------------------------------
def _transformer_layer_kernel(
    x_ref,
    ln1_g_ref, ln1_b_ref,
    wqkv_ref,
    wo_ref, bo_ref,
    ln2_g_ref, ln2_b_ref,
    w1_ref, b1_ref,
    w2_ref, b2_ref,
    o_ref,
    *, heads, dim_head,
):
    _, N, D = x_ref.shape
    inner = heads * dim_head
    scale = dim_head ** -0.5

    x = x_ref[0].astype(jnp.float32)                              # (N, D), f32 residual stream

    # ---------------- PreNorm + multi-head self-attention ----------------
    xn = _layer_norm_f32(x, ln1_g_ref[...], ln1_b_ref[...])
    qkv = jnp.dot(xn.astype(jnp.bfloat16), wqkv_ref[...],
                  preferred_element_type=jnp.float32)             # (N, 3*inner)

    def split_heads(t):   # (N, inner) f32 -> (heads, N, dim_head) f32 ('n (h d) -> h n d')
        return jnp.transpose(t.reshape(N, heads, dim_head), (1, 0, 2))

    # lane-aligned slices (inner is a multiple of 128 for the chosen dims / real ViT configs)
    q = split_heads(qkv[:, 0 * inner:1 * inner] * scale)
    k = split_heads(qkv[:, 1 * inner:2 * inner])
    v = split_heads(qkv[:, 2 * inner:3 * inner])

    s = jnp.einsum("hnd,hmd->hnm", q.astype(jnp.bfloat16), k.astype(jnp.bfloat16),
                   preferred_element_type=jnp.float32)            # (heads, N, N), f32
    s = s - jnp.max(s, axis=-1, keepdims=True)
    p = jnp.exp(s)
    p = p * pl.reciprocal(jnp.sum(p, axis=-1, keepdims=True), approx=True)
    ctx = jnp.einsum("hnm,hmd->hnd", p.astype(jnp.bfloat16), v.astype(jnp.bfloat16),
                     preferred_element_type=jnp.float32)          # (heads, N, dh), f32

    msa = jnp.transpose(ctx, (1, 0, 2)).reshape(N, inner)          # 'h n d -> n (h d)'
    attn_out = jnp.dot(msa.astype(jnp.bfloat16), wo_ref[...],
                       preferred_element_type=jnp.float32) + bo_ref[...]
    # TODO(synk): nn.Dropout layers are identity here (inference/eval semantics).
    x = x + attn_out

    # ---------------- PreNorm + FFN ----------------
    xn = _layer_norm_f32(x, ln2_g_ref[...], ln2_b_ref[...])
    h1 = jnp.dot(xn.astype(jnp.bfloat16), w1_ref[...],
                 preferred_element_type=jnp.float32) + b1_ref[...]
    h1 = 0.5 * h1 * (1.0 + lax.erf(h1 * _INV_SQRT2))               # exact (erf) GELU
    h2 = jnp.dot(h1.astype(jnp.bfloat16), w2_ref[...],
                 preferred_element_type=jnp.float32) + b2_ref[...]

    o_ref[0] = (x + h2).astype(o_ref.dtype)


def transformer_layer(x, p, *, heads, dim_head):
    B, N, D = x.shape
    inner = heads * dim_head
    mlp_dim = p["w1"].shape[1]

    def rep(shape):  # replicated operand: whole array, constant block index
        return pl.BlockSpec(shape, lambda b, _n=len(shape): (0,) * _n)

    kernel = functools.partial(_transformer_layer_kernel, heads=heads, dim_head=dim_head)

    return pl.pallas_call(
        kernel,
        out_shape=jax.ShapeDtypeStruct((B, N, D), x.dtype),
        grid=(B,),
        in_specs=[
            pl.BlockSpec((1, N, D), lambda b: (b, 0, 0)),          # x: one batch element / step
            rep((1, D)), rep((1, D)),                              # ln1 gamma / beta
            rep((D, 3 * inner)),                                   # W_qkv (bias-free), bf16
            rep((inner, D)), rep((1, D)),                          # W_out (bf16), b_out
            rep((1, D)), rep((1, D)),                              # ln2 gamma / beta
            rep((D, mlp_dim)), rep((1, mlp_dim)),                  # FFN W1 (bf16), b1
            rep((mlp_dim, D)), rep((1, D)),                        # FFN W2 (bf16), b2
        ],
        out_specs=pl.BlockSpec((1, N, D), lambda b: (b, 0, 0)),
        input_output_aliases={0: 0},                               # write residual stream in place
        compiler_params=pltpu.CompilerParams(
            dimension_semantics=("parallel",),
            vmem_limit_bytes=48 * 1024 * 1024),
    )(x, p["ln1_g"], p["ln1_b"], p["wqkv"], p["wo"], p["bo"],
      p["ln2_g"], p["ln2_b"], p["w1"], p["b1"], p["w2"], p["b2"])


# ---------------------------------------------------------------------------
# Patch-embedding linear and classification head
# ---------------------------------------------------------------------------
def _linear_kernel(x_ref, w_ref, b_ref, o_ref):
    o_ref[...] = (jnp.dot(x_ref[...].astype(jnp.bfloat16), w_ref[...],
                          preferred_element_type=jnp.float32) + b_ref[...]
                  ).astype(o_ref.dtype)


def pallas_linear(x2d, w, b):
    M = x2d.shape[0]
    N = w.shape[1]
    return pl.pallas_call(
        _linear_kernel,
        out_shape=jax.ShapeDtypeStruct((M, N), jnp.float32),
    )(x2d, w, b)


def _head_kernel(x_ref, g_ref, b_ref, w_ref, bias_ref, o_ref):
    x = x_ref[...].astype(jnp.float32)
    xn = _layer_norm_f32(x, g_ref[...], b_ref[...])
    o_ref[...] = (jnp.dot(xn.astype(jnp.bfloat16), w_ref[...],
                          preferred_element_type=jnp.float32) + bias_ref[...]
                  ).astype(o_ref.dtype)


def pallas_mlp_head(x, g, b, w, bias):
    B = x.shape[0]
    C = w.shape[1]
    return pl.pallas_call(
        _head_kernel,
        out_shape=jax.ShapeDtypeStruct((B, C), jnp.float32),
    )(x, g, b, w, bias)


# ---------------------------------------------------------------------------
# Full ViT forward (layout glue in JAX, heavy math in Pallas)
# ---------------------------------------------------------------------------
def vit_forward(img, params, *, patch_size, heads, dim_head, pool="cls"):
    B, C, H, W = img.shape
    ph = pw = patch_size
    nh, nw = H // ph, W // pw
    dim = params["patch_w"].shape[1]

    # einops 'b c (h p1) (w p2) -> b (h w) (p1 p2 c)'  (pure layout, wrapper side)
    x = img.reshape(B, C, nh, ph, nw, pw).transpose(0, 2, 4, 3, 5, 1)
    x = x.reshape(B * nh * nw, ph * pw * C)
    x = pallas_linear(x, params["patch_w"], params["patch_b"]).reshape(B, nh * nw, dim)

    cls = jnp.broadcast_to(params["cls_token"].astype(x.dtype), (B, 1, dim))
    x = jnp.concatenate([cls, x], axis=1)                          # (B, N, dim), N = nh*nw + 1
    x = x + params["pos_emb"][:, : x.shape[1]]
    # TODO(synk): emb_dropout is identity (eval semantics).

    for layer in params["layers"]:
        x = transformer_layer(x, layer, heads=heads, dim_head=dim_head)

    pooled = jnp.mean(x, axis=1) if pool == "mean" else x[:, 0]
    return pallas_mlp_head(pooled, params["head_ln_g"], params["head_ln_b"],
                           params["head_w"], params["head_b"])


# ---------------------------------------------------------------------------
# Deterministic parameter init (xavier-uniform weights stored bf16, rest f32)
# ---------------------------------------------------------------------------
def _xavier_uniform(key, fan_in, fan_out, dtype=jnp.bfloat16):
    bound = (6.0 / (fan_in + fan_out)) ** 0.5
    w = jax.random.uniform(key, (fan_in, fan_out), jnp.float32, -bound, bound)
    return w.astype(dtype)


def init_vit(key, *, image_size, patch_size, channels, num_classes,
             dim, num_layers, heads, dim_head, mlp_dim):
    nh = image_size // patch_size
    num_patches = nh * nh
    patch_dim = channels * patch_size * patch_size
    inner = heads * dim_head

    keys = jax.random.split(key, 4 + 4 * num_layers)
    ki = iter(keys)

    params = dict(
        patch_w=_xavier_uniform(next(ki), patch_dim, dim),
        patch_b=jnp.zeros((1, dim), jnp.float32),
        cls_token=jax.random.normal(next(ki), (1, 1, dim), dtype=jnp.float32),
        pos_emb=jax.random.normal(next(ki), (1, num_patches + 1, dim), dtype=jnp.float32),
        head_ln_g=jnp.ones((1, dim), jnp.float32),
        head_ln_b=jnp.zeros((1, dim), jnp.float32),
        head_w=_xavier_uniform(next(ki), dim, num_classes),
        head_b=jnp.zeros((1, num_classes), jnp.float32),
        layers=[],
    )
    for _ in range(num_layers):
        k1, k2, k3, k4 = (next(ki) for _ in range(4))
        params["layers"].append(dict(
            ln1_g=jnp.ones((1, dim), jnp.float32),
            ln1_b=jnp.zeros((1, dim), jnp.float32),
            wqkv=_xavier_uniform(k1, dim, 3 * inner),
            wo=_xavier_uniform(k2, inner, dim),
            bo=jnp.zeros((1, dim), jnp.float32),
            ln2_g=jnp.ones((1, dim), jnp.float32),
            ln2_b=jnp.zeros((1, dim), jnp.float32),
            w1=_xavier_uniform(k3, dim, mlp_dim),
            b1=jnp.zeros((1, mlp_dim), jnp.float32),
            w2=_xavier_uniform(k4, mlp_dim, dim),
            b2=jnp.zeros((1, dim), jnp.float32),
        ))
    return params


# ---------------------------------------------------------------------------
# Pure-JAX f32 reference (mirrors the PyTorch ViT forward in eval mode)
# ---------------------------------------------------------------------------
def vit_reference(img, params, *, patch_size, heads, dim_head, pool="cls", eps=_LN_EPS):
    f32 = lambda a: a.astype(jnp.float32)
    B, C, H, W = img.shape
    ph = pw = patch_size
    nh, nw = H // ph, W // pw
    dim = params["patch_w"].shape[1]
    inner = heads * dim_head
    scale = dim_head ** -0.5

    def ln(y, g, b):
        mu = jnp.mean(y, axis=-1, keepdims=True)
        var = jnp.mean((y - mu) ** 2, axis=-1, keepdims=True)
        return (y - mu) / jnp.sqrt(var + eps) * g + b

    x = img.reshape(B, C, nh, ph, nw, pw).transpose(0, 2, 4, 3, 5, 1)
    x = x.reshape(B, nh * nw, ph * pw * C)
    x = x @ f32(params["patch_w"]) + params["patch_b"][0]
    cls = jnp.broadcast_to(params["cls_token"], (B, 1, dim))
    x = jnp.concatenate([cls, x], axis=1)
    x = x + params["pos_emb"][:, : x.shape[1]]

    N = x.shape[1]
    for p in params["layers"]:
        xn = ln(x, p["ln1_g"][0], p["ln1_b"][0])
        qkv = xn @ f32(p["wqkv"])
        q, k, v = jnp.split(qkv, 3, axis=-1)
        reh = lambda t: t.reshape(B, N, heads, dim_head).transpose(0, 2, 1, 3)
        q, k, v = reh(q), reh(k), reh(v)
        dots = jnp.einsum("bhid,bhjd->bhij", q, k) * scale
        attn = jax.nn.softmax(dots, axis=-1)
        out = jnp.einsum("bhij,bhjd->bhid", attn, v)
        out = out.transpose(0, 2, 1, 3).reshape(B, N, inner)
        x = x + (out @ f32(p["wo"]) + p["bo"][0])
        xn = ln(x, p["ln2_g"][0], p["ln2_b"][0])
        h1 = jax.nn.gelu(xn @ f32(p["w1"]) + p["b1"][0], approximate=False)
        x = x + (h1 @ f32(p["w2"]) + p["b2"][0])

    pooled = jnp.mean(x, axis=1) if pool == "mean" else x[:, 0]
    pooled = ln(pooled, params["head_ln_g"][0], params["head_ln_b"][0])
    return pooled @ f32(params["head_w"]) + params["head_b"][0]


if __name__ == "__main__":
    # Small ViT config; D, inner and mlp_dim are multiples of 128 (lane-dense matmuls/stores).
    image_size, patch_size, channels = 16, 4, 3
    num_classes = 10
    dim, num_layers, heads, dim_head, mlp_dim = 128, 2, 4, 32, 256
    B = 2

    key = jax.random.PRNGKey(0)
    key, img_key, param_key = jax.random.split(key, 3)
    img = jax.random.normal(img_key, (B, channels, image_size, image_size), dtype=jnp.float32)
    params = init_vit(param_key, image_size=image_size, patch_size=patch_size,
                      channels=channels, num_classes=num_classes, dim=dim,
                      num_layers=num_layers, heads=heads, dim_head=dim_head,
                      mlp_dim=mlp_dim)

    fwd = jax.jit(functools.partial(vit_forward, patch_size=patch_size,
                                    heads=heads, dim_head=dim_head, pool="cls"))
    logits = jax.block_until_ready(fwd(img, params))

    ref = vit_reference(img, params, patch_size=patch_size, heads=heads,
                        dim_head=dim_head, pool="cls")

    assert logits.shape == (B, num_classes)
    rel_err = jnp.linalg.norm(logits - ref) / (jnp.linalg.norm(ref) + 1e-8)
    assert float(rel_err) < 2e-2, f"mismatch vs reference: rel_err={float(rel_err):.3e}"
    print("KERNEL_OK")
</pallas_src>

<mosaic_0001>
module attributes {stable_mosaic.version = 11 : i64} {
  func.func @_linear_kernel(%arg0: memref<32x48xf32, #tpu.memory_space<vmem>>, %arg1: memref<48x128xbf16, #tpu.memory_space<vmem>>, %arg2: memref<1x128xf32, #tpu.memory_space<vmem>>, %arg3: memref<32x128xf32, #tpu.memory_space<vmem>>) attributes {dimension_semantics = [], scalar_prefetch = 0 : i64, scratch_operands = 0 : i64, tpu.core_type = #tpu.core_type<tc>} {
    %c0 = arith.constant 0 : index
    %c0_0 = arith.constant 0 : index
    %0 = vector.load %arg0[%c0, %c0_0] : memref<32x48xf32, #tpu.memory_space<vmem>>, vector<32x48xf32>
    %1 = arith.truncf %0 : vector<32x48xf32> to vector<32x48xbf16>
    %c0_1 = arith.constant 0 : index
    %c0_2 = arith.constant 0 : index
    %2 = vector.load %arg1[%c0_1, %c0_2] : memref<48x128xbf16, #tpu.memory_space<vmem>>, vector<48x128xbf16>
    %cst = arith.constant dense<0.000000e+00> : vector<32x128xf32>
    %3 = tpu.matmul %1, %2, %cst {dimension_numbers = #tpu.dot_dimension_numbers<[1], [0], [0], [1], [0, 0, 1, 1], [], []>} : vector<32x48xbf16>, vector<48x128xbf16>, vector<32x128xf32> -> vector<32x128xf32>
    %c0_3 = arith.constant 0 : index
    %c0_4 = arith.constant 0 : index
    %4 = vector.load %arg2[%c0_3, %c0_4] : memref<1x128xf32, #tpu.memory_space<vmem>>, vector<1x128xf32>
    %5 = vector.broadcast %4 : vector<1x128xf32> to vector<32x128xf32>
    %6 = arith.addf %3, %5 : vector<32x128xf32>
    %c0_5 = arith.constant 0 : index
    %c0_6 = arith.constant 0 : index
    %7 = vector.load %arg3[%c0_5, %c0_6] : memref<32x128xf32, #tpu.memory_space<vmem>>, vector<32x128xf32>
    tpu.vector_store %arg3[%c0_5, %c0_6], %6 {strides = array<i32>} : memref<32x128xf32, #tpu.memory_space<vmem>>, vector<32x128xf32>,
    return
  }
}

module attributes {stable_mosaic.version = 11 : i64} {
  func.func @_head_kernel(%arg0: memref<2x128xf32, #tpu.memory_space<vmem>>, %arg1: memref<1x128xf32, #tpu.memory_space<vmem>>, %arg2: memref<1x128xf32, #tpu.memory_space<vmem>>, %arg3: memref<128x10xbf16, #tpu.memory_space<vmem>>, %arg4: memref<1x10xf32, #tpu.memory_space<vmem>>, %arg5: memref<2x10xf32, #tpu.memory_space<vmem>>) attributes {dimension_semantics = [], scalar_prefetch = 0 : i64, scratch_operands = 0 : i64, tpu.core_type = #tpu.core_type<tc>} {
    %c0 = arith.constant 0 : index
    %c0_0 = arith.constant 0 : index
    %0 = vector.load %arg0[%c0, %c0_0] : memref<2x128xf32, #tpu.memory_space<vmem>>, vector<2x128xf32>
    %c0_1 = arith.constant 0 : index
    %c0_2 = arith.constant 0 : index
    %1 = vector.load %arg1[%c0_1, %c0_2] : memref<1x128xf32, #tpu.memory_space<vmem>>, vector<1x128xf32>
    %c0_3 = arith.constant 0 : index
    %c0_4 = arith.constant 0 : index
    %2 = vector.load %arg2[%c0_3, %c0_4] : memref<1x128xf32, #tpu.memory_space<vmem>>, vector<1x128xf32>
    %cst = arith.constant dense<0.000000e+00> : vector<2xf32>
    %3 = vector.multi_reduction <add>, %0, %cst [1] : vector<2x128xf32> to vector<2xf32>
    %4 = vector.shape_cast %3 : vector<2xf32> to vector<2x1xf32>
    %cst_5 = arith.constant 1.280000e+02 : f32
    %5 = vector.broadcast %cst_5 : f32 to vector<2x1xf32>
    %6 = arith.divf %4, %5 : vector<2x1xf32>
    %7 = vector.broadcast %6 : vector<2x1xf32> to vector<2x128xf32>
    %8 = arith.subf %0, %7 : vector<2x128xf32>
    %9 = arith.mulf %8, %8 : vector<2x128xf32>
    %cst_6 = arith.constant dense<0.000000e+00> : vector<2xf32>
    %10 = vector.multi_reduction <add>, %9, %cst_6 [1] : vector<2x128xf32> to vector<2xf32>
    %11 = vector.shape_cast %10 : vector<2xf32> to vector<2x1xf32>
    %cst_7 = arith.constant 1.280000e+02 : f32
    %12 = vector.broadcast %cst_7 : f32 to vector<2x1xf32>
    %13 = arith.divf %11, %12 : vector<2x1xf32>
    %14 = vector.broadcast %6 : vector<2x1xf32> to vector<2x128xf32>
    %15 = arith.subf %0, %14 : vector<2x128xf32>
    %cst_8 = arith.constant 9.99999974E-6 : f32
    %16 = vector.broadcast %cst_8 : f32 to vector<2x1xf32>
    %17 = arith.addf %13, %16 : vector<2x1xf32>
    %18 = math.rsqrt %17 : vector<2x1xf32>
    %19 = vector.broadcast %18 : vector<2x1xf32> to vector<2x128xf32>
    %20 = arith.mulf %15, %19 : vector<2x128xf32>
    %21 = vector.broadcast %1 : vector<1x128xf32> to vector<2x128xf32>
    %22 = arith.mulf %20, %21 : vector<2x128xf32>
    %23 = vector.broadcast %2 : vector<1x128xf32> to vector<2x128xf32>
    %24 = arith.addf %22, %23 : vector<2x128xf32>
    %25 = arith.truncf %24 : vector<2x128xf32> to vector<2x128xbf16>
    %c0_9 = arith.constant 0 : index
    %c0_10 = arith.constant 0 : index
    %26 = vector.load %arg3[%c0_9, %c0_10] : memref<128x10xbf16, #tpu.memory_space<vmem>>, vector<128x10xbf16>
    %cst_11 = arith.constant dense<0.000000e+00> : vector<2x10xf32>
    %27 = tpu.matmul %25, %26, %cst_11 {dimension_numbers = #tpu.dot_dimension_numbers<[1], [0], [0], [1], [0, 0, 1, 1], [], []>} : vector<2x128xbf16>, vector<128x10xbf16>, vector<2x10xf32> -> vector<2x10xf32>
    %c0_12 = arith.constant 0 : index
    %c0_13 = arith.constant 0 : index
    %28 = vector.load %arg4[%c0_12, %c0_13] : memref<1x10xf32, #tpu.memory_space<vmem>>, vector<1x10xf32>
    %29 = vector.broadcast %28 : vector<1x10xf32> to vector<2x10xf32>
    %30 = arith.addf %27, %29 : vector<2x10xf32>
    %c0_14 = arith.constant 0 : index
    %c0_15 = arith.constant 0 : index
    %31 = vector.load %arg5[%c0_14, %c0_15] : memref<2x10xf32, #tpu.memory_space<vmem>>, vector<2x10xf32>
    tpu.vector_store %arg5[%c0_14, %c0_15], %30 {strides = array<i32>} : memref<2x10xf32, #tpu.memory_space<vmem>>, vector<2x10xf32>,
    return
  }
}

module attributes {stable_mosaic.version = 11 : i64} {
  func.func @_transformer_layer_kernel(%arg0: i32, %arg1: memref<1x17x128xf32, #tpu.memory_space<vmem>>, %arg2: memref<1x128xf32, #tpu.memory_space<vmem>>, %arg3: memref<1x128xf32, #tpu.memory_space<vmem>>, %arg4: memref<128x384xbf16, #tpu.memory_space<vmem>>, %arg5: memref<128x128xbf16, #tpu.memory_space<vmem>>, %arg6: memref<1x128xf32, #tpu.memory_space<vmem>>, %arg7: memref<1x128xf32, #tpu.memory_space<vmem>>, %arg8: memref<1x128xf32, #tpu.memory_space<vmem>>, %arg9: memref<128x256xbf16, #tpu.memory_space<vmem>>, %arg10: memref<1x256xf32, #tpu.memory_space<vmem>>, %arg11: memref<256x128xbf16, #tpu.memory_space<vmem>>, %arg12: memref<1x128xf32, #tpu.memory_space<vmem>>, %arg13: memref<1x17x128xf32, #tpu.memory_space<vmem>>) attributes {dimension_semantics = [#tpu.dimension_semantics<parallel>], iteration_bounds = array<i64: 2>, scalar_prefetch = 0 : i64, scratch_operands = 0 : i64, tpu.core_type = #tpu.core_type<tc>, window_params = [{transform_indices = @transform_0, window_bounds = array<i64: 1, 17, 128>}, {pipeline_mode = #tpu.pipeline_mode<synchronous>, transform_indices = @transform_1, window_bounds = array<i64: 1, 128>}, {pipeline_mode = #tpu.pipeline_mode<synchronous>, transform_indices = @transform_2, window_bounds = array<i64: 1, 128>}, {pipeline_mode = #tpu.pipeline_mode<synchronous>, transform_indices = @transform_3, window_bounds = array<i64: 128, 384>}, {pipeline_mode = #tpu.pipeline_mode<synchronous>, transform_indices = @transform_4, window_bounds = array<i64: 128, 128>}, {pipeline_mode = #tpu.pipeline_mode<synchronous>, transform_indices = @transform_5, window_bounds = array<i64: 1, 128>}, {pipeline_mode = #tpu.pipeline_mode<synchronous>, transform_indices = @transform_6, window_bounds = array<i64: 1, 128>}, {pipeline_mode = #tpu.pipeline_mode<synchronous>, transform_indices = @transform_7, window_bounds = array<i64: 1, 128>}, {pipeline_mode = #tpu.pipeline_mode<synchronous>, transform_indices = @transform_8, window_bounds = array<i64: 128, 256>}, {pipeline_mode = #tpu.pipeline_mode<synchronous>, transform_indices = @transform_9, window_bounds = array<i64: 1, 256>}, {pipeline_mode = #tpu.pipeline_mode<synchronous>, transform_indices = @transform_10, window_bounds = array<i64: 256, 128>}, {pipeline_mode = #tpu.pipeline_mode<synchronous>, transform_indices = @transform_11, window_bounds = array<i64: 1, 128>}, {transform_indices = @transform_12, window_bounds = array<i64: 1, 17, 128>}]} {
    %c0 = arith.constant 0 : index
    %c0_0 = arith.constant 0 : index
    %c0_1 = arith.constant 0 : index
    %0 = vector.load %arg1[%c0, %c0_0, %c0_1] : memref<1x17x128xf32, #tpu.memory_space<vmem>>, vector<1x17x128xf32>
    %1 = vector.shape_cast %0 : vector<1x17x128xf32> to vector<17x128xf32>
    %c0_2 = arith.constant 0 : index
    %c0_3 = arith.constant 0 : index
    %2 = vector.load %arg2[%c0_2, %c0_3] : memref<1x128xf32, #tpu.memory_space<vmem>>, vector<1x128xf32>
    %c0_4 = arith.constant 0 : index
    %c0_5 = arith.constant 0 : index
    %3 = vector.load %arg3[%c0_4, %c0_5] : memref<1x128xf32, #tpu.memory_space<vmem>>, vector<1x128xf32>
    %cst = arith.constant dense<0.000000e+00> : vector<17xf32>
    %4 = vector.multi_reduction <add>, %1, %cst [1] : vector<17x128xf32> to vector<17xf32>
    %5 = vector.shape_cast %4 : vector<17xf32> to vector<17x1xf32>
    %cst_6 = arith.constant 1.280000e+02 : f32
    %6 = vector.broadcast %cst_6 : f32 to vector<17x1xf32>
    %7 = arith.divf %5, %6 : vector<17x1xf32>
    %8 = vector.broadcast %7 : vector<17x1xf32> to vector<17x128xf32>
    %9 = arith.subf %1, %8 : vector<17x128xf32>
    %10 = arith.mulf %9, %9 : vector<17x128xf32>
    %cst_7 = arith.constant dense<0.000000e+00> : vector<17xf32>
    %11 = vector.multi_reduction <add>, %10, %cst_7 [1] : vector<17x128xf32> to vector<17xf32>
    %12 = vector.shape_cast %11 : vector<17xf32> to vector<17x1xf32>
    %cst_8 = arith.constant 1.280000e+02 : f32
    %13 = vector.broadcast %cst_8 : f32 to vector<17x1xf32>
    %14 = arith.divf %12, %13 : vector<17x1xf32>
    %15 = vector.broadcast %7 : vector<17x1xf32> to vector<17x128xf32>
    %16 = arith.subf %1, %15 : vector<17x128xf32>
    %cst_9 = arith.constant 9.99999974E-6 : f32
    %17 = vector.broadcast %cst_9 : f32 to vector<17x1xf32>
    %18 = arith.addf %14, %17 : vector<17x1xf32>
    %19 = math.rsqrt %18 : vector<17x1xf32>
    %20 = vector.broadcast %19 : vector<17x1xf32> to vector<17x128xf32>
    %21 = arith.mulf %16, %20 : vector<17x128xf32>
    %22 = vector.broadcast %2 : vector<1x128xf32> to vector<17x128xf32>
    %23 = arith.mulf %21, %22 : vector<17x128xf32>
    %24 = vector.broadcast %3 : vector<1x128xf32> to vector<17x128xf32>
    %25 = arith.addf %23, %24 : vector<17x128xf32>
    %26 = arith.truncf %25 : vector<17x128xf32> to vector<17x128xbf16>
    %c0_10 = arith.constant 0 : index
    %c0_11 = arith.constant 0 : index
    %27 = vector.load %arg4[%c0_10, %c0_11] : memref<128x384xbf16, #tpu.memory_space<vmem>>, vector<128x384xbf16>
    %cst_12 = arith.constant dense<0.000000e+00> : vector<17x384xf32>
    %28 = tpu.matmul %26, %27, %cst_12 {dimension_numbers = #tpu.dot_dimension_numbers<[1], [0], [0], [1], [0, 0, 1, 1], [], []>} : vector<17x128xbf16>, vector<128x384xbf16>, vector<17x384xf32> -> vector<17x384xf32>
    %29 = vector.extract_strided_slice %28 {offsets = [0, 0], sizes = [17, 128], strides = [1, 1]} : vector<17x384xf32> to vector<17x128xf32>
    %cst_13 = arith.constant 0.176776692 : f32
    %30 = vector.broadcast %cst_13 : f32 to vector<17x128xf32>
    %31 = arith.mulf %29, %30 : vector<17x128xf32>
    %32 = vector.shape_cast %31 : vector<17x128xf32> to vector<17x4x32xf32>
    %33 = tpu.transpose %32, [1, 0, 2] : vector<17x4x32xf32> -> vector<4x17x32xf32>
    %34 = vector.extract_strided_slice %28 {offsets = [0, 128], sizes = [17, 128], strides = [1, 1]} : vector<17x384xf32> to vector<17x128xf32>
    %35 = vector.shape_cast %34 : vector<17x128xf32> to vector<17x4x32xf32>
    %36 = tpu.transpose %35, [1, 0, 2] : vector<17x4x32xf32> -> vector<4x17x32xf32>
    %37 = vector.extract_strided_slice %28 {offsets = [0, 256], sizes = [17, 128], strides = [1, 1]} : vector<17x384xf32> to vector<17x128xf32>
    %38 = vector.shape_cast %37 : vector<17x128xf32> to vector<17x4x32xf32>
    %39 = tpu.transpose %38, [1, 0, 2] : vector<17x4x32xf32> -> vector<4x17x32xf32>
    %40 = arith.truncf %33 : vector<4x17x32xf32> to vector<4x17x32xbf16>
    %41 = arith.truncf %36 : vector<4x17x32xf32> to vector<4x17x32xbf16>
    "tpu.trace_start"() <{level = 10 : i32, message = "hnd,hmd->hnm"}> : () -> ()
    %cst_14 = arith.constant dense<0.000000e+00> : vector<4x17x17xf32>
    %42 = tpu.matmul %40, %41, %cst_14 {dimension_numbers = #tpu.dot_dimension_numbers<[2], [2], [1], [1], [0, 0, 0, 1, 1, 1], [0], [0]>} : vector<4x17x32xbf16>, vector<4x17x32xbf16>, vector<4x17x17xf32> -> vector<4x17x17xf32>
    "tpu.trace_stop"() : () -> ()
    %cst_15 = arith.constant dense<0xFF800000> : vector<4x17xf32>
    %43 = vector.multi_reduction <maximumf>, %42, %cst_15 [2] : vector<4x17x17xf32> to vector<4x17xf32>
    %44 = vector.shape_cast %43 : vector<4x17xf32> to vector<4x17x1xf32>
    %45 = vector.broadcast %44 : vector<4x17x1xf32> to vector<4x17x17xf32>
    %46 = arith.subf %42, %45 : vector<4x17x17xf32>
    %47 = math.exp %46 : vector<4x17x17xf32>
    %cst_16 = arith.constant dense<0.000000e+00> : vector<4x17xf32>
    %48 = vector.multi_reduction <add>, %47, %cst_16 [2] : vector<4x17x17xf32> to vector<4x17xf32>
    %49 = vector.shape_cast %48 : vector<4x17xf32> to vector<4x17x1xf32>
    %50 = tpu.reciprocal %49 {approx = true} : vector<4x17x1xf32> -> vector<4x17x1xf32>
    %51 = vector.broadcast %50 : vector<4x17x1xf32> to vector<4x17x17xf32>
    %52 = arith.mulf %47, %51 : vector<4x17x17xf32>
    %53 = arith.truncf %52 : vector<4x17x17xf32> to vector<4x17x17xbf16>
    %54 = arith.truncf %39 : vector<4x17x32xf32> to vector<4x17x32xbf16>
    "tpu.trace_start"() <{level = 10 : i32, message = "hnm,hmd->hnd"}> : () -> ()
    %cst_17 = arith.constant dense<0.000000e+00> : vector<4x17x32xf32>
    %55 = tpu.matmul %53, %54, %cst_17 {dimension_numbers = #tpu.dot_dimension_numbers<[2], [1], [1], [2], [0, 0, 0, 1, 1, 2], [0], [0]>} : vector<4x17x17xbf16>, vector<4x17x32xbf16>, vector<4x17x32xf32> -> vector<4x17x32xf32>
    "tpu.trace_stop"() : () -> ()
    %56 = tpu.transpose %55, [1, 0, 2] : vector<4x17x32xf32> -> vector<17x4x32xf32>
    %57 = vector.shape_cast %56 : vector<17x4x32xf32> to vector<17x128xf32>
    %58 = arith.truncf %57 : vector<17x128xf32> to vector<17x128xbf16>
    %c0_18 = arith.constant 0 : index
    %c0_19 = arith.constant 0 : index
    %59 = vector.load %arg5[%c0_18, %c0_19] : memref<128x128xbf16, #tpu.memory_space<vmem>>, vector<128x128xbf16>
    %cst_20 = arith.constant dense<0.000000e+00> : vector<17x128xf32>
    %60 = tpu.matmul %58, %59, %cst_20 {dimension_numbers = #tpu.dot_dimension_numbers<[1], [0], [0], [1], [0, 0, 1, 1], [], []>} : vector<17x128xbf16>, vector<128x128xbf16>, vector<17x128xf32> -> vector<17x128xf32>
    %c0_21 = arith.constant 0 : index
    %c0_22 = arith.constant 0 : index
    %61 = vector.load %arg6[%c0_21, %c0_22] : memref<1x128xf32, #tpu.memory_space<vmem>>, vector<1x128xf32>
    %62 = vector.broadcast %61 : vector<1x128xf32> to vector<17x128xf32>
    %63 = arith.addf %60, %62 : vector<17x128xf32>
    %64 = arith.addf %1, %63 : vector<17x128xf32>
    %c0_23 = arith.constant 0 : index
    %c0_24 = arith.constant 0 : index
    %65 = vector.load %arg7[%c0_23, %c0_24] : memref<1x128xf32, #tpu.memory_space<vmem>>, vector<1x128xf32>
    %c0_25 = arith.constant 0 : index
    %c0_26 = arith.constant 0 : index
    %66 = vector.load %arg8[%c0_25, %c0_26] : memref<1x128xf32, #tpu.memory_space<vmem>>, vector<1x128xf32>
    %cst_27 = arith.constant dense<0.000000e+00> : vector<17xf32>
    %67 = vector.multi_reduction <add>, %64, %cst_27 [1] : vector<17x128xf32> to vector<17xf32>
    %68 = vector.shape_cast %67 : vector<17xf32> to vector<17x1xf32>
    %cst_28 = arith.constant 1.280000e+02 : f32
    %69 = vector.broadcast %cst_28 : f32 to vector<17x1xf32>
    %70 = arith.divf %68, %69 : vector<17x1xf32>
    %71 = vector.broadcast %70 : vector<17x1xf32> to vector<17x128xf32>
    %72 = arith.subf %64, %71 : vector<17x128xf32>
    %73 = arith.mulf %72, %72 : vector<17x128xf32>
    %cst_29 = arith.constant dense<0.000000e+00> : vector<17xf32>
    %74 = vector.multi_reduction <add>, %73, %cst_29 [1] : vector<17x128xf32> to vector<17xf32>
    %75 = vector.shape_cast %74 : vector<17xf32> to vector<17x1xf32>
    %cst_30 = arith.constant 1.280000e+02 : f32
    %76 = vector.broadcast %cst_30 : f32 to vector<17x1xf32>
    %77 = arith.divf %75, %76 : vector<17x1xf32>
    %78 = vector.broadcast %70 : vector<17x1xf32> to vector<17x128xf32>
    %79 = arith.subf %64, %78 : vector<17x128xf32>
    %cst_31 = arith.constant 9.99999974E-6 : f32
    %80 = vector.broadcast %cst_31 : f32 to vector<17x1xf32>
    %81 = arith.addf %77, %80 : vector<17x1xf32>
    %82 = math.rsqrt %81 : vector<17x1xf32>
    %83 = vector.broadcast %82 : vector<17x1xf32> to vector<17x128xf32>
    %84 = arith.mulf %79, %83 : vector<17x128xf32>
    %85 = vector.broadcast %65 : vector<1x128xf32> to vector<17x128xf32>
    %86 = arith.mulf %84, %85 : vector<17x128xf32>
    %87 = vector.broadcast %66 : vector<1x128xf32> to vector<17x128xf32>
    %88 = arith.addf %86, %87 : vector<17x128xf32>
    %89 = arith.truncf %88 : vector<17x128xf32> to vector<17x128xbf16>
    %c0_32 = arith.constant 0 : index
    %c0_33 = arith.constant 0 : index
    %90 = vector.load %arg9[%c0_32, %c0_33] : memref<128x256xbf16, #tpu.memory_space<vmem>>, vector<128x256xbf16>
    %cst_34 = arith.constant dense<0.000000e+00> : vector<17x256xf32>
    %91 = tpu.matmul %89, %90, %cst_34 {dimension_numbers = #tpu.dot_dimension_numbers<[1], [0], [0], [1], [0, 0, 1, 1], [], []>} : vector<17x128xbf16>, vector<128x256xbf16>, vector<17x256xf32> -> vector<17x256xf32>
    %c0_35 = arith.constant 0 : index
    %c0_36 = arith.constant 0 : index
    %92 = vector.load %arg10[%c0_35, %c0_36] : memref<1x256xf32, #tpu.memory_space<vmem>>, vector<1x256xf32>
    %93 = vector.broadcast %92 : vector<1x256xf32> to vector<17x256xf32>
    %94 = arith.addf %91, %93 : vector<17x256xf32>
    %cst_37 = arith.constant 5.000000e-01 : f32
    %95 = vector.broadcast %cst_37 : f32 to vector<17x256xf32>
    %96 = arith.mulf %95, %94 : vector<17x256xf32>
    %cst_38 = arith.constant 0.707106769 : f32
    %97 = vector.broadcast %cst_38 : f32 to vector<17x256xf32>
    %98 = arith.mulf %94, %97 : vector<17x256xf32>
    %99 = math.erf %98 : vector<17x256xf32>
    %cst_39 = arith.constant 1.000000e+00 : f32
    %100 = vector.broadcast %cst_39 : f32 to vector<17x256xf32>
    %101 = arith.addf %100, %99 : vector<17x256xf32>
    %102 = arith.mulf %96, %101 : vector<17x256xf32>
    %103 = arith.truncf %102 : vector<17x256xf32> to vector<17x256xbf16>
    %c0_40 = arith.constant 0 : index
    %c0_41 = arith.constant 0 : index
    %104 = vector.load %arg11[%c0_40, %c0_41] : memref<256x128xbf16, #tpu.memory_space<vmem>>, vector<256x128xbf16>
    %cst_42 = arith.constant dense<0.000000e+00> : vector<17x128xf32>
    %105 = tpu.matmul %103, %104, %cst_42 {dimension_numbers = #tpu.dot_dimension_numbers<[1], [0], [0], [1], [0, 0, 1, 1], [], []>} : vector<17x256xbf16>, vector<256x128xbf16>, vector<17x128xf32> -> vector<17x128xf32>
    %c0_43 = arith.constant 0 : index
    %c0_44 = arith.constant 0 : index
    %106 = vector.load %arg12[%c0_43, %c0_44] : memref<1x128xf32, #tpu.memory_space<vmem>>, vector<1x128xf32>
    %107 = vector.broadcast %106 : vector<1x128xf32> to vector<17x128xf32>
    %108 = arith.addf %105, %107 : vector<17x128xf32>
    %109 = arith.addf %64, %108 : vector<17x128xf32>
    %c0_45 = arith.constant 0 : index
    %c0_46 = arith.constant 0 : index
    %c0_47 = arith.constant 0 : index
    %110 = vector.load %arg13[%c0_45, %c0_46, %c0_47] : memref<1x17x128xf32, #tpu.memory_space<vmem>>, vector<1x17x128xf32>
    %111 = vector.shape_cast %110 : vector<1x17x128xf32> to vector<17x128xf32>
    %112 = vector.shape_cast %109 : vector<17x128xf32> to vector<1x17x128xf32>
    tpu.vector_store %arg13[%c0_45, %c0_46, %c0_47], %112 {strides = array<i32>} : memref<1x17x128xf32, #tpu.memory_space<vmem>>, vector<1x17x128xf32>,
    return
  }
  func.func @transform_0(%arg0: i32) -> (i32, i32, i32) {
    %c0_i32 = arith.constant 0 : i32
    %c0_i32_0 = arith.constant 0 : i32
    %c0_i32_1 = arith.constant 0 : i32
    return %arg0, %c0_i32, %c0_i32_0 : i32, i32, i32
  }
  func.func @transform_1(%arg0: i32) -> (i32, i32) {
    %c0_i32 = arith.constant 0 : i32
    %c0_i32_0 = arith.constant 0 : i32
    %c0_i32_1 = arith.constant 0 : i32
    return %c0_i32, %c0_i32_0 : i32, i32
  }
  func.func @transform_2(%arg0: i32) -> (i32, i32) {
    %c0_i32 = arith.constant 0 : i32
    %c0_i32_0 = arith.constant 0 : i32
    %c0_i32_1 = arith.constant 0 : i32
    return %c0_i32, %c0_i32_0 : i32, i32
  }
  func.func @transform_3(%arg0: i32) -> (i32, i32) {
    %c0_i32 = arith.constant 0 : i32
    %c0_i32_0 = arith.constant 0 : i32
    %c0_i32_1 = arith.constant 0 : i32
    return %c0_i32, %c0_i32_0 : i32, i32
  }
  func.func @transform_4(%arg0: i32) -> (i32, i32) {
    %c0_i32 = arith.constant 0 : i32
    %c0_i32_0 = arith.constant 0 : i32
    %c0_i32_1 = arith.constant 0 : i32
    return %c0_i32, %c0_i32_0 : i32, i32
  }
  func.func @transform_5(%arg0: i32) -> (i32, i32) {
    %c0_i32 = arith.constant 0 : i32
    %c0_i32_0 = arith.constant 0 : i32
    %c0_i32_1 = arith.constant 0 : i32
    return %c0_i32, %c0_i32_0 : i32, i32
  }
  func.func @transform_6(%arg0: i32) -> (i32, i32) {
    %c0_i32 = arith.constant 0 : i32
    %c0_i32_0 = arith.constant 0 : i32
    %c0_i32_1 = arith.constant 0 : i32
    return %c0_i32, %c0_i32_0 : i32, i32
  }
  func.func @transform_7(%arg0: i32) -> (i32, i32) {
    %c0_i32 = arith.constant 0 : i32
    %c0_i32_0 = arith.constant 0 : i32
    %c0_i32_1 = arith.constant 0 : i32
    return %c0_i32, %c0_i32_0 : i32, i32
  }
  func.func @transform_8(%arg0: i32) -> (i32, i32) {
    %c0_i32 = arith.constant 0 : i32
    %c0_i32_0 = arith.constant 0 : i32
    %c0_i32_1 = arith.constant 0 : i32
    return %c0_i32, %c0_i32_0 : i32, i32
  }
  func.func @transform_9(%arg0: i32) -> (i32, i32) {
    %c0_i32 = arith.constant 0 : i32
    %c0_i32_0 = arith.constant 0 : i32
    %c0_i32_1 = arith.constant 0 : i32
    return %c0_i32, %c0_i32_0 : i32, i32
  }
  func.func @transform_10(%arg0: i32) -> (i32, i32) {
    %c0_i32 = arith.constant 0 : i32
    %c0_i32_0 = arith.constant 0 : i32
    %c0_i32_1 = arith.constant 0 : i32
    return %c0_i32, %c0_i32_0 : i32, i32
  }
  func.func @transform_11(%arg0: i32) -> (i32, i32) {
    %c0_i32 = arith.constant 0 : i32
    %c0_i32_0 = arith.constant 0 : i32
    %c0_i32_1 = arith.constant 0 : i32
    return %c0_i32, %c0_i32_0 : i32, i32
  }
  func.func @transform_12(%arg0: i32) -> (i32, i32, i32) {
    %c0_i32 = arith.constant 0 : i32
    %c0_i32_0 = arith.constant 0 : i32
    %c0_i32_1 = arith.constant 0 : i32
    return %arg0, %c0_i32, %c0_i32_0 : i32, i32, i32
  }
}

</mosaic_0001>

<bundles_post_ra>
// kernel: vit_forward.4
= control target key start
LH: loop header
LB: loop body
LE: loop exit
PB: predicated region body
PF: predicated region fallthrough
CT: control target
= control target key end

     0   :  { %vm52_vm0 = vcmask 392192   ;;  %s196_s1 = inlined_call_operand.vmem [shape: bf16[48,128], index: 1, kind: input, shape index: {}]   ;;  %s197_s0 = inlined_call_operand.vmem [shape: f32[32,48], index: 0, kind: input, shape index: {}]   ;;  %s198_s2 = inlined_call_operand.vmem [shape: f32[1,128], index: 2, kind: input, shape index: {}]   ;;  %s199_s3 = inlined_call_operand.vmem [shape: f32[32,128], index: 3, kind: output, shape index: {}]  }
   0x1   :  { %v137_v0 = vld [vmem:[%s196_s1] sm:$0xff]   ;;  %v138_v1 = vld [vmem:[%s196_s1 + $0x8] sm:$0xff]   ;;  %v139_v4 = vld [vmem:[%s196_s1 + $0x10] sm:$0xff]  }
   0x2   :  { %127 = vmatprep.subr.bf16.mxu0 %v137_v0  ;;  %v15_v2 = vld [vmem:[%s197_s0] sm:$0xff]  ;;  %v16_v3 = vld [vmem:[%s197_s0 + $0x8] sm:$0xff]  ;;  %v17_v6 = vld [vmem:[%s197_s0 + $0x10] sm:$0xff] }
   0x3   :  { %128 = vmatpush3.bf16.msra.mxu0 %v137_v0  ;;  %v19_v5 = vpack.c.bf16 %v16_v3, %v15_v2  ;;  %v18_v7 = vld [vmem:[%s197_s0 + $0x18] sm:$0xff]  ;;  %v116_v9 = vld [vmem:[%s198_s2] ss:$0 sm:$0xff] }
   0x4   :  { %129 = vmatprep.subr.bf16.mxu0 %v138_v1  ;;  %v20_v8 = vpack.c.bf16 %v18_v7, %v17_v6 }
   0x5   :  { %133 = vmatprep.mubr.msk.bf16.mxu0 %vm52_vm0, %v19_v5 }
   0x7   :  { %130 = vmatpush3.bf16.msra.mxu0 %v138_v1 }
   0x8   :  { %131 = vmatprep.subr.bf16.mxu0 %v139_v4 }
   0xb   :  { %132 = vmatpush3.bf16.msra.mxu0 %v139_v4 }
   0xe   :  { %134 = vmatmul.mubr.msk.bf16.vlgmr.msra.gmra.mrb[0].mxu0 %vm52_vm0, %v20_v8 }
  0xe1   :  { %v135_v10 = vpop.f32.mrb[0].mxu0 }
  0xe2   :  { %v102_v11 = vadd.f32 %v135_v10, %v116_v9  ;;  %v93_v12 = vpop.f32.mrb[1].mxu0 }
  0xe3   :  { %v94_v13 = vadd.f32 %v116_v9, %v93_v12  ;;  %v136_v14 = vpop.f32.mrb[2].mxu0 }
  0xe4   :  { %110 = vst [vmem:[%s199_s3 + $0x10] sm:$0xff] %v102_v11  ;;  %v105_v15 = vadd.f32 %v136_v14, %v116_v9  ;;  %v96_v16 = vpop.f32.mrb[3].mxu0 }
  0xe5   :  { %108 = vst [vmem:[%s199_s3] sm:$0xff] %v94_v13  ;;  %v97_v17 = vadd.f32 %v116_v9, %v96_v16 }
  0xe6   :  { %111 = vst [vmem:[%s199_s3 + $0x18] sm:$0xff] %v105_v15 }
  0xe7   :  { %109 = vst [vmem:[%s199_s3 + $0x8] sm:$0xff] %v97_v17 }

// kernel: vit_forward.7
= control target key start
LH: loop header
LB: loop body
LE: loop exit
PB: predicated region body
PF: predicated region fallthrough
CT: control target
= control target key end

     0   :  { %vm25_vm0 = vcmask 1041408   ;;  %s342_s0 = inlined_call_operand.vmem [shape: f32[2,128], index: 0, kind: input, shape index: {}]   ;;  %s343_s1 = inlined_call_operand.vmem [shape: f32[1,128], index: 1, kind: input, shape index: {}]   ;;  %s344_s2 = inlined_call_operand.vmem [shape: f32[1,128], index: 2, kind: input, shape index: {}]   ;;  %s345_s3 = inlined_call_operand.vmem [shape: bf16[128,10], index: 3, kind: input, shape index: {}]   ;;  %s346_s4 = inlined_call_operand.vmem [shape: f32[1,10], index: 4, kind: input, shape index: {}]   ;;  %s347_s5 = inlined_call_operand.hbm [shape: f32[2,10], index: 5, kind: output, shape index: {}]  }
   0x1   :  { %v22_v0 = vld [vmem:[%s342_s0] sm:$0x3] }
   0x2   :  { %v26_v1 = vsel %vm25_vm0, %v22_v0, 0.0 }
   0x3   :  { %27 = vadd.xlane.f32.xlu0 %v26_v1 }
   0x4   :  { %10 = vsyncpa [#allocation3], 0  ;;  %v225_v2 = vld [vmem:[%s345_s3] sm:$0xff]   ;;  %v259_v3 = vmov 0.0   ;;  %v226_v4 = vld [vmem:[%s345_s3 + $0x8] sm:$0xff]   ;;  %vm260_vm1 = vmmov 0  }
   0x5   :  { %202 = vmatprep.subr.bf16.mxu0 %v259_v3  ;;  %v227_v10 = vld [vmem:[%s345_s3 + $0x10] sm:$0xff]   ;;  %v228_v11 = vld [vmem:[%s345_s3 + $0x18] sm:$0xff]   ;;  %v229_v12 = vld [vmem:[%s345_s3 + $0x20] sm:$0xff]   ;;  %218 = vmatprep.mubr.msk.bf16.mxu0 %vm260_vm1, %v259_v3  ;;  %s261_s15 = smov [#allocation2]   ;;  %vm166_vm2 = vcmask 74752  }
   0x6   :  { %203 = vmatpush3.bf16.msra.mxu0 %v225_v2  ;;  %v230_v13 = vld [vmem:[%s345_s3 + $0x28] sm:$0xff]   ;;  %v231_v14 = vld [vmem:[%s345_s3 + $0x30] sm:$0xff]   ;;  %v232_v15 = vld [vmem:[%s345_s3 + $0x38] sm:$0xff]   ;;  %s174_s16 = sshll.u32 %s261_s15, 4  ;;  %s175_s16 = int_to_ptr.vmem [resolvable:$true] %s174_s16 }
   0x7   :  { %204 = vmatprep.subr.bf16.mxu0 %v259_v3  ;;  %v182_v20 = vld [vmem:[%s343_s1] ss:$0 sm:$0xff]  ;;  %s235_s1 = scalar_lea.vmem %s175_s16, 32  ;;  %p240_p1 = scmp.lt.s32.totalorder %s175_s16, %s175_s16 }
   0x8   :  { %v183_v22 = vld [vmem:[%s344_s2] ss:$0 sm:$0xff]  ;;  %p236_p0 = scmp.ne.s32.totalorder %s175_s16, %s235_s1  ;;  %p241_p2 = scmp.lt.s32.totalorder %s235_s1, %s235_s1 }
   0x9   :  { %v184_v26 = vld [vmem:[%s346_s4] ss:$0 sm:$0xff] }
   0xa   :  { %205 = vmatpush3.bf16.msra.mxu0 %v226_v4  ;;  %p242_p3 = por %p241_p2, %p240_p1 }
   0xb   :  { %206 = vmatprep.subr.bf16.mxu0 %v259_v3 }
   0xc   :  { %p243_p4 = pnand %p242_p3, %p236_p0 }
   0xe   :  { %207 = vmatpush3.bf16.msra.mxu0 %v227_v10 }
   0xf   :  { %208 = vmatprep.subr.bf16.mxu0 %v259_v3 }
  0x12   :  { %209 = vmatpush3.bf16.msra.mxu0 %v228_v11 }
  0x13   :  { %210 = vmatprep.subr.bf16.mxu0 %v259_v3 }
  0x16   :  { %211 = vmatpush3.bf16.msra.mxu0 %v229_v12 }
  0x17   :  { %212 = vmatprep.subr.bf16.mxu0 %v259_v3 }
  0x1a   :  { %213 = vmatpush3.bf16.msra.mxu0 %v230_v13 }
  0x1b   :  { %214 = vmatprep.subr.bf16.mxu0 %v259_v3 }
  0x1e   :  { %215 = vmatpush3.bf16.msra.mxu0 %v231_v14 }
  0x1f   :  { %216 = vmatprep.subr.bf16.mxu0 %v259_v3 }
  0x22   :  { %217 = vmatpush3.bf16.msra.mxu0 %v232_v15 }
  0x90   :  { %v28_v5 = vpop.xlane.xlu0 %27 }
  0x91   :  { %v30_v6 = vmul.f32 0.0078125, %v28_v5 }
  0x93   :  { %v31_v7 = vsub.f32 %v22_v0, %v30_v6 }
  0x95   :  { %v32_v8 = vmul.f32 %v31_v7, %v31_v7 }
  0x97   :  { %v33_v9 = vsel %vm25_vm0, %v32_v8, 0.0 }
  0x98   :  { %34 = vadd.xlane.f32.xlu0 %v33_v9 }
 0x125   :  { %v35_v16 = vpop.xlane.xlu0 %34 }
 0x126   :  { %v36_v17 = vmul.f32 0.0078125, %v35_v16 }
 0x128   :  { %v37_v18 = vadd.f32 1e-05, %v36_v17 }
 0x12a   :  { %233 = vrsqrt.f32 %v37_v18 }
 0x134   :  { %v234_v19 = vpop.eup %233 }
 0x135   :  { %v39_v21 = vmul.f32 %v234_v19, %v31_v7 }
 0x137   :  { %v46_v23 = vmul.f32 %v182_v20, %v39_v21 }
 0x139   :  { %v53_v24 = vadd.f32 %v183_v22, %v46_v23 }
 0x13b   :  { %v54_v25 = vpack.c.bf16 %v53_v24, %v53_v24 }
 0x13d   :  { %219 = vmatmul.mubr.bf16.vlgmr.msra.gmra.mrb[0].mxu0 %v54_v25 }
 0x210   :  { %v160_v27 = vpop.f32.mrb[0].mxu0 }
 0x211   :  { %v161_v28 = vadd.f32 %v184_v26, %v160_v27  ;;  %v220_v29 = vpop.f32.mrb[1].mxu0 }
 0x212   :  { %v163_v30 = vpop.f32.mrb[2].mxu0 }
 0x213   :  { %v221_v31 = vpop.f32.mrb[3].mxu0  ;;  %167 = vst.msk [vmem:[#allocation2] sm:$0x3] %vm166_vm2, %v161_v28 }
 0x214   :  { %246 = shalt.err (!%p243_p4)
}
 0x215   :  { %s247_s4 = scalar_lea.hbm %s347_s5, 32 }
 0x216   :  { %p248_p5 = scmp.ne.s32.totalorder %s347_s5, %s247_s4  ;;  %p251_p6 = scmp.lt.u32.totalorder %s247_s4, %s347_s5 }
 0x218   :  { %p253_p7 = pnand %p251_p6, %p248_p5 }
 0x21a   :  { %256 = shalt.err (!%p253_p7)
}
 0x21b   :  { %177 = dma.vmem_to_hbm [thread:$0]  %s175_s16, 32, %s347_s5, [#allocation3]  }
 0x21c   :  { %257 = dma.done.wait [#allocation3], 32  }
 0x21d   :  { %258 = vsyncadd [#allocation3], 4294967264 }
 0x21e   :  { %181 = vsyncpa [#allocation3], 1 }

// kernel: vit_forward.5
= control target key start
LH: loop header
LB: loop body
LE: loop exit
PB: predicated region body
PF: predicated region fallthrough
CT: control target
= control target key end

     0   :  { %s3980_s21 = smov 0   ;;  %s4788_s0 = inlined_call_operand.vmem [shape: f32[2,17,128], index: 0, kind: input, shape index: {}, may-alias: {0,12}]   ;;  %s4789_s1 = inlined_call_operand.vmem [shape: f32[1,128], index: 1, kind: input, shape index: {}]   ;;  %s4790_s2 = inlined_call_operand.vmem [shape: f32[1,128], index: 2, kind: input, shape index: {}]   ;;  %s4791_s3 = inlined_call_operand.vmem [shape: bf16[128,384], index: 3, kind: input, shape index: {}]   ;;  %s4792_s4 = inlined_call_operand.vmem [shape: bf16[128,128], index: 4, kind: input, shape index: {}]   ;;  %s4793_s5 = inlined_call_operand.vmem [shape: f32[1,128], index: 5, kind: input, shape index: {}]   ;;  %s4794_s6 = inlined_call_operand.vmem [shape: f32[1,128], index: 6, kind: input, shape index: {}]   ;;  %s4795_s7 = inlined_call_operand.vmem [shape: f32[1,128], index: 7, kind: input, shape index: {}]   ;;  %s4796_s8 = inlined_call_operand.vmem [shape: bf16[128,256], index: 8, kind: input, shape index: {}]   ;;  %s4797_s9 = inlined_call_operand.vmem [shape: f32[1,256], index: 9, kind: input, shape index: {}]   ;;  %s4798_s10 = inlined_call_operand.vmem [shape: bf16[256,128], index: 10, kind: input, shape index: {}]   ;;  %s4799_s11 = inlined_call_operand.vmem [shape: f32[1,128], index: 11, kind: input, shape index: {}]   ;;  %s4800_s12 = inlined_call_operand.vmem [shape: f32[2,17,128], index: 12, kind: output, shape index: {}, may-alias: {0,12}]  }
   0x1 LB: > { %s3411_s22 = sadd.s32 4294967295, %s3906_s21   ;;  %p3415_p0 = scmp.ge.s32.totalorder %s3906_s21, 1  ;;  %s3906_s21 = sphi %s3980_s21, %s22_s21  }
   0x2   : > { %p362_p1 = scmp.lt.s32.totalorder %s3906_s21, 3 }
   0x4   : > { %p363_p2 = pnand %p3415_p0, %p362_p1 }
   0x5   : > { %p404_p3 = scmp.lt.s32.totalorder (!%p363_p2), %s3411_s22, 1  ;;  %vm424_vm0 = vcmask (!%p363_p2), 1040384   ;;  %v3745_v4 = vld [vmem:[%s4791_s3 + $0x4] ss:$12 sps:$4 sm:$0xff] (!%p363_p2)   ;;  %v3747_v5 = vld [vmem:[%s4791_s3] ss:$12 sps:$4 sm:$0xff] (!%p363_p2)  }
   0x6   : > { %366 = sbr.rel (%p363_p2) target bundleno = 2694 (0xa86), region = 68  ;;  %v3748_v6 = vld [vmem:[%s4791_s3 + $0x8] ss:$12 sps:$4 sm:$0xff] (!%p363_p2)   ;;  %637 = vmatprep.subr.bf16.mxu0 (!%p363_p2), %v3745_v4  ;;  %v3751_v21 = vld [vmem:[%s4791_s3 + $0x18] ss:$12 sps:$4 sm:$0xff] (!%p363_p2)   ;;  %v3908_v37 = vmov (!%p363_p2), 0  }
   0x7   : > { %v3749_v7 = vld [vmem:[%s4791_s3 + $0x1c] ss:$12 sps:$4 sm:$0xff] (!%p363_p2)   ;;  %3602 = vmatprep.subr.bf16.mxu1 (!%p363_p2), %v3748_v6  ;;  %638 = vmatpush1.bf16.msra.mxu0 (!%p363_p2), %v3747_v5  ;;  %v3752_v22 = vld [vmem:[%s4791_s3 + $0x20] ss:$12 sps:$4 sm:$0xff] (!%p363_p2)   ;;  %v3756_v25 = vld [vmem:[%s4791_s3 + $0x38] ss:$12 sps:$4 sm:$0xff] (!%p363_p2)  }
   0x8   : > { %3603 = vmatpush3.bf16.msra.mxu1 (!%p363_p2), %v3748_v6  ;;  %639 = vmatprep.subr.bf16.mxu0 (!%p363_p2), %v3749_v7  ;;  %v3753_v23 = vld [vmem:[%s4791_s3 + $0x34] ss:$12 sps:$4 sm:$0xff] (!%p363_p2)   ;;  %v3755_v24 = vld [vmem:[%s4791_s3 + $0x30] ss:$12 sps:$4 sm:$0xff] (!%p363_p2)   ;;  %v3757_v26 = vld [vmem:[%s4791_s3 + $0x4c] ss:$12 sps:$4 sm:$0xff] (!%p363_p2)  }
   0x9   : > { %3604 = vmatprep.subr.bf16.mxu1 (!%p363_p2), %v3752_v22  ;;  %v3759_v27 = vld [vmem:[%s4791_s3 + $0x48] ss:$12 sps:$4 sm:$0xff] (!%p363_p2)   ;;  %v3760_v28 = vld [vmem:[%s4791_s3 + $0x50] ss:$12 sps:$4 sm:$0xff] (!%p363_p2)   ;;  %v3763_v30 = vld [vmem:[%s4791_s3 + $0x60] ss:$12 sps:$4 sm:$0xff] (!%p363_p2)   ;;  %669 = vmatprep.mubr.bf16.mxu0 (!%p363_p2), %v3908_v37 }
   0xa   : > { %v3761_v29 = vld [vmem:[%s4791_s3 + $0x64] ss:$12 sps:$4 sm:$0xff] (!%p363_p2)   ;;  %v3764_v31 = vld [vmem:[%s4791_s3 + $0x68] ss:$12 sps:$4 sm:$0xff] (!%p363_p2)   ;;  %v3768_v33 = vld [vmem:[%s4791_s3 + $0x80] ss:$12 sps:$4 sm:$0xff] (!%p363_p2)  }
   0xb   : > { %640 = vmatpush1.bf16.msra.mxu0 (!%p363_p2), %v3751_v21  ;;  %v3765_v32 = vld [vmem:[%s4791_s3 + $0x7c] ss:$12 sps:$4 sm:$0xff] (!%p363_p2)   ;;  %v3767_v34 = vld [vmem:[%s4791_s3 + $0x78] ss:$12 sps:$4 sm:$0xff] (!%p363_p2)   ;;  %v3769_v35 = vld [vmem:[%s4791_s3 + $0x94] ss:$12 sps:$4 sm:$0xff] (!%p363_p2)  }
   0xc   : > { %3605 = vmatpush3.bf16.msra.mxu1 (!%p363_p2), %v3752_v22  ;;  %641 = vmatprep.subr.bf16.mxu0 (!%p363_p2), %v3753_v23  ;;  %v3772_v36 = vld [vmem:[%s4791_s3 + $0x98] ss:$12 sps:$4 sm:$0xff] (!%p363_p2)   ;;  %v3771_v38 = vld [vmem:[%s4791_s3 + $0x90] ss:$12 sps:$4 sm:$0xff] (!%p363_p2)   ;;  %v3775_v41 = vld [vmem:[%s4791_s3 + $0xa8] ss:$12 sps:$4 sm:$0xff] (!%p363_p2)  }
   0xd   : > { %s4802_s22 = smov (!%p404_p3, %s3411_s22), 1  ;;  %3606 = vmatprep.subr.bf16.mxu1 %v3756_v25  ;;  %v3773_v39 = vld [vmem:[%s4791_s3 + $0xac] ss:$12 sps:$4 sm:$0xff]   ;;  %v3776_v40 = vld [vmem:[%s4791_s3 + $0xb0] ss:$12 sps:$4 sm:$0xff]   ;;  %s3909_s19 = smov 64  }
   0xe   : > { %s3714_s23 = smul.u32 24, %s4802_s22  ;;  %v3418_v53 = vld [vmem:[%s4789_s1] ss:$0 sm:$0xff]  ;;  %s3910_s20 = smov 96   ;;  %v3913_v21 = vmov 1934713408  }
   0xf   : > { %642 = vmatpush1.bf16.msra.mxu0 %v3755_v24  ;;  %v3419_v59 = vld [vmem:[%s4790_s2] ss:$0 sm:$0xff]  ;;  %s3911_s24 = smov 32   ;;  %v804_v22 = vunpack.c.l.s4 %v3913_v21  ;;  %vm1805_vm1 = vcmask 261120   ;;  %vm2053_vm2 = vcmask 131072   ;;  %vm2046_vm3 = vcmask 138240  }
  0x10   : > { %s3996_s26 = scalar_lea.vmem %s4788_s0, %s3714_s23  ;;  %3607 = vmatpush3.bf16.msra.mxu1 %v3756_v25  ;;  %643 = vmatprep.subr.bf16.mxu0 %v3757_v26  ;;  %vm2785_vm4 = vcmask 523264   ;;  %vm2789_vm5 = vcmask 785408  }
  0x11   : > { %v415_v0 = vld [vmem:[%s3996_s26] sm:$0xff]  ;;  %v417_v1 = vld [vmem:[%s3996_s26 + $0x10] sm:$0x1]  ;;  %v416_v2 = vld [vmem:[%s3996_s26 + $0x8] sm:$0xff]  ;;  %3608 = vmatprep.subr.bf16.mxu1 %v3760_v28 }
  0x12   : > { %420 = vadd.xlane.f32.xlu0 %v415_v0  ;;  %v425_v3 = vsel %vm424_vm0, %v417_v1, 0.0 }
  0x13   : > { %426 = vadd.xlane.f32.xlu1 %v425_v3  ;;  %644 = vmatpush1.bf16.msra.mxu0 %v3759_v27  ;;  %v805_v27 = vunpack.c.0.s8 %v804_v22 }
  0x14   : > { %3609 = vmatpush3.bf16.msra.mxu1 %v3760_v28  ;;  %645 = vmatprep.subr.bf16.mxu0 %v3761_v29 }
  0x15   : > { %3610 = vmatprep.subr.bf16.mxu1 %v3764_v31 }
  0x16   : > { %422 = vadd.xlane.f32.xlu0 %v416_v2 }
  0x17   : > { %646 = vmatpush1.bf16.msra.mxu0 %v3763_v30 }
  0x18   : > { %3611 = vmatpush3.bf16.msra.mxu1 %v3764_v31  ;;  %647 = vmatprep.subr.bf16.mxu0 %v3765_v32 }
  0x19   : > { %3612 = vmatprep.subr.bf16.mxu1 %v3768_v33 }
  0x1b   : > { %648 = vmatpush1.bf16.msra.mxu0 %v3767_v34 }
  0x1c   : > { %3613 = vmatpush3.bf16.msra.mxu1 %v3768_v33  ;;  %649 = vmatprep.subr.bf16.mxu0 %v3769_v35 }
  0x1d   : > { %3614 = vmatprep.subr.bf16.mxu1 %v3772_v36 }
  0x1f   : > { %650 = vmatpush1.bf16.msra.mxu0 %v3771_v38 }
  0x20   : > { %3615 = vmatpush3.bf16.msra.mxu1 %v3772_v36  ;;  %651 = vmatprep.subr.bf16.mxu0 %v3773_v39 }
  0x21   : > { %3616 = vmatprep.subr.bf16.mxu1 %v3776_v40 }
  0x23   : > { %652 = vmatpush1.bf16.msra.mxu0 %v3775_v41 }
  0x24   : > { %3617 = vmatpush3.bf16.msra.mxu1 %v3776_v40 }
  0x9f   : > { %v421_v8 = vpop.xlane.xlu0 %420 }
  0xa0   : > { %v429_v9 = vmul.f32 0.0078125, %v421_v8  ;;  %v427_v10 = vpop.xlane.xlu1 %426 }
  0xa1   : > { %v431_v11 = vmul.f32 0.0078125, %v427_v10 }
  0xa2   : > { %v4014_v12 = vsub.f32 %v415_v0, %v429_v9 }
  0xa3   : > { %v4016_v13 = vsub.f32 %v417_v1, %v431_v11  ;;  %v423_v14 = vpop.xlane.xlu0 %422 }
  0xa4   : > { %v430_v15 = vmul.f32 0.0078125, %v423_v14  ;;  %v435_v16 = vmul.f32 %v4014_v12, %v4014_v12 }
  0xa5   : > { %v437_v17 = vmul.f32 %v4016_v13, %v4016_v13 }
  0xa6   : > { %v4022_v18 = vsub.f32 %v416_v2, %v430_v15  ;;  %438 = vadd.xlane.f32.xlu1 %v435_v16 }
  0xa7   : > { %v442_v19 = vsel %vm424_vm0, %v437_v17, 0.0 }
  0xa8   : > { %v436_v20 = vmul.f32 %v4022_v18, %v4022_v18 }
  0xaa   : > { %443 = vadd.xlane.f32.xlu1 %v442_v19  ;;  %440 = vadd.xlane.f32.xlu0 %v436_v20  ;;  %v774_v20 = vlaneseq }
  0xac   : > { %v4157_v24 = vshrl.u32 %v774_v20, 7 }
  0xae   : > { %v4163_v35 = vsub.s32 %v805_v27, %v4157_v24 }
 0x133   : > { %v439_v42 = vpop.xlane.xlu1 %438 }
 0x134   : > { %v445_v43 = vmul.f32 0.0078125, %v439_v42 }
 0x136   : > { %v448_v44 = vadd.f32 1e-05, %v445_v43 }
 0x137   : > { %v444_v45 = vpop.xlane.xlu1 %443  ;;  %v441_v46 = vpop.xlane.xlu0 %440 }
 0x138   : > { %3825 = vrsqrt.f32 %v448_v44  ;;  %v447_v47 = vmul.f32 0.0078125, %v444_v45  ;;  %v446_v48 = vmul.f32 0.0078125, %v441_v46 }
 0x13a   : > { %v450_v49 = vadd.f32 1e-05, %v447_v47  ;;  %v449_v50 = vadd.f32 1e-05, %v446_v48 }
 0x13c   : > { %3827 = vrsqrt.f32 %v450_v49 }
 0x13d   : > { %3829 = vrsqrt.f32 %v449_v50 }
 0x142   : > { %v3826_v51 = vpop.eup %3825 }
 0x143   : > { %v454_v52 = vmul.f32 %v3826_v51, %v4014_v12 }
 0x145   : > { %v463_v58 = vmul.f32 %v3418_v53, %v454_v52 }
 0x146   : > { %v3828_v54 = vpop.eup %3827 }
 0x147   : > { %v3830_v55 = vpop.eup %3829  ;;  %v456_v56 = vmul.f32 %v3828_v54, %v4016_v13  ;;  %v472_v63 = vadd.f32 %v3419_v59, %v463_v58 }
 0x148   : > { %v455_v57 = vmul.f32 %v3830_v55, %v4022_v18  ;;  %v3912_v18 = vmov 1983009808  }
 0x149   : > { %v465_v60 = vmul.f32 %v3418_v53, %v456_v56  ;;  %v772_v19 = vunpack.c.l.s4 %v3912_v18 }
 0x14a   : > { %v464_v61 = vmul.f32 %v3418_v53, %v455_v57 }
 0x14b   : > { %v474_v62 = vadd.f32 %v3419_v59, %v465_v60  ;;  %v773_v23 = vunpack.c.0.s8 %v772_v19 }
 0x14c   : > { %v473_v0 = vadd.f32 %v3419_v59, %v464_v61 }
 0x14d   : > { %v476_v1 = vpack.c.bf16 %v474_v62, %v474_v62  ;;  %v4160_v28 = vsub.s32 %v773_v23, %v4157_v24 }
 0x14e   : > { %v475_v2 = vpack.c.bf16 %v473_v0, %v472_v63 }
 0x150   : > { %670 = vmatmul.mubr.bf16.vlgmr.msra.gmra.mrb[0].mxu0 %v475_v2  ;;  %3618 = vmatprep.mubr.bf16.mxu1 %v475_v2 }
 0x151   : > { %3619 = vmatmul.mubr.bf16.vlgmr.msra.gmra.mrb[0].mxu1 %v476_v1  ;;  %679 = vmatprep.mubr.bf16.mxu0 %v3908_v37 }
 0x158   : > { %680 = vmatmul.mubr.bf16.gmra.mrb[4].mxu0 %v476_v1 }
 0x223   : > { %v671_v3 = vpop.f32.mrb[0].mxu0 }
 0x224   : > { %v673_v4 = vpop.f32.mrb[1].mxu0  ;;  %v4098_v5 = vpop.f32.mrb[0].mxu1  ;;  %v4123_v16 = vmul.f32 0.17677669, %v671_v3 }
 0x225   : > { %v4100_v6 = vpop.f32.mrb[1].mxu1  ;;  %1101 = vrot.lane.b32.xlu1 %v673_v4, %s3909_s19  ;;  %1092 = vrot.lane.b32.xlu0 %v673_v4, %s3910_s20  ;;  %v675_v7 = vpop.f32.mrb[2].mxu0 }
 0x226   : > { %v4104_v8 = vpop.f32.mrb[3].mxu0  ;;  %v3621_v9 = vpop.f32.mrb[2].mxu1  ;;  %v4111_v11 = vmul.f32 0.17677669, %v675_v7 }
 0x227   : > { %v4106_v10 = vpop.f32.mrb[3].mxu1 }
 0x229   : > { %1110 = vrot.lane.b32.xlu0 %v673_v4, %s3911_s24  ;;  %1094 = vrot.lane.b32.xlu1 %v4104_v8, %s3910_s20 }
 0x22b   : > { %v681_v12 = vpop.f32.mrb[4].mxu0 }
 0x22c   : > { %v4113_v13 = vpop.f32.mrb[5].mxu0  ;;  %v4137_v17 = vmul.f32 0.17677669, %v681_v12 }
 0x22d   : > { %744 = vrot.lane.b32.xlu0 %v4111_v11, %s3910_s20  ;;  %1103 = vrot.lane.b32.xlu1 %v4104_v8, %s3909_s19  ;;  %v685_v14 = vpop.f32.mrb[6].mxu0 }
 0x22e   : > { %v686_v15 = vpop.f32.mrb[7].mxu0 }
 0x231   : > { %753 = vrot.lane.b32.xlu0 %v4111_v11, %s3909_s19  ;;  %1112 = vrot.lane.b32.xlu1 %v4104_v8, %s3911_s24 }
 0x235   : > { %742 = vrot.lane.b32.xlu1 %v4123_v16, %s3910_s20  ;;  %1096 = vrot.lane.b32.xlu0 %v4113_v13, %s3910_s20 }
 0x239   : > { %751 = vrot.lane.b32.xlu1 %v4123_v16, %s3909_s19  ;;  %1114 = vrot.lane.b32.xlu0 %v4113_v13, %s3911_s24 }
 0x23d   : > { %1105 = vrot.lane.b32.xlu1 %v4113_v13, %s3909_s19  ;;  %762 = vrot.lane.b32.xlu0 %v4111_v11, %s3911_s24 }
 0x241   : > { %760 = vrot.lane.b32.xlu1 %v4123_v16, %s3911_s24  ;;  %755 = vrot.lane.b32.xlu0 %v4137_v17, %s3909_s19 }
 0x245   : > { %746 = vrot.lane.b32.xlu1 %v4137_v17, %s3910_s20  ;;  %1442 = vrot.lane.b32.xlu0 %v4100_v6, %s3910_s20 }
 0x249   : > { %764 = vrot.lane.b32.xlu1 %v4137_v17, %s3911_s24  ;;  %1460 = vrot.lane.b32.xlu0 %v4100_v6, %s3911_s24 }
 0x24d   : > { %1444 = vrot.lane.b32.xlu1 %v4106_v10, %s3910_s20 }
 0x251   : > { %1451 = vrot.lane.b32.xlu1 %v4100_v6, %s3909_s19 }
 0x255   : > { %1453 = vrot.lane.b32.xlu1 %v4106_v10, %s3909_s19 }
 0x297   : > { %v1102_v25 = vpop.permute.xlu1 %1101  ;;  %v1093_v26 = vpop.permute.xlu0 %1092 }
 0x298   : > { %v1119_v29 = vcombine.low %v673_v4, %v1102_v25  ;;  %v1120_v30 = vcombine.high %v673_v4, %v1102_v25 }
 0x29a   : > { %v1127_v36 = vrot.slane %v1119_v29, %v4160_v28  ;;  %v1134_v38 = vrot.slane %v1120_v30, %v4160_v28 }
 0x29b   : > { %v1111_v31 = vpop.permute.xlu0 %1110  ;;  %v1095_v32 = vpop.permute.xlu1 %1094 }
 0x29c   : > { %v1135_v33 = vcombine.low %v1093_v26, %v1111_v31  ;;  %v1136_v34 = vcombine.high %v1093_v26, %v1111_v31 }
 0x29e   : > { %v1143_v39 = vrot.slane %v1135_v33, %v4160_v28  ;;  %v1150_v40 = vrot.slane %v1136_v34, %v4160_v28 }
 0x29f   : > { %v4169_v41 = vpop.permute.xlu0 %744  ;;  %v1104_v42 = vpop.permute.xlu1 %1103 }
 0x2a0   : > { %v1151_v43 = vcombine.low %v1127_v36, %v1143_v39  ;;  %v1152_v44 = vcombine.high %v1127_v36, %v1143_v39  ;;  %v1167_v45 = vcombine.low %v1134_v38, %v1150_v40  ;;  %v1168_v46 = vcombine.high %v1134_v38, %v1150_v40 }
 0x2a1   : > { %v1187_v51 = vcombine.low %v4104_v8, %v1104_v42  ;;  %v1188_v52 = vcombine.high %v4104_v8, %v1104_v42 }
 0x2a2   : > { %v1159_v47 = vrot.slane %v1151_v43, %v4163_v35  ;;  %v1166_v48 = vrot.slane %v1152_v44, %v4163_v35  ;;  %v1175_v49 = vrot.slane %v1167_v45, %v4163_v35  ;;  %v1182_v50 = vrot.slane %v1168_v46, %v4163_v35 }
 0x2a3   : > { %v754_v53 = vpop.permute.xlu0 %753  ;;  %v1113_v54 = vpop.permute.xlu1 %1112  ;;  %v1195_v1 = vrot.slane %v1187_v51, %v4160_v28  ;;  %v1202_v2 = vrot.slane %v1188_v52, %v4160_v28 }
 0x2a4   : > { %v1272_v55 = vcombine.low %v1159_v47, %v1166_v48  ;;  %v3448_v56 = vcombine.high %v1159_v47, %v1166_v48  ;;  %v1288_v57 = vcombine.low %v1175_v49, %v1182_v50  ;;  %v3449_v58 = vcombine.high %v1175_v49, %v1182_v50 }
 0x2a5   : > { %v1203_v59 = vcombine.low %v1095_v32, %v1113_v54  ;;  %v1204_v60 = vcombine.high %v1095_v32, %v1113_v54  ;;  %v837_v9 = vcombine.low %v4111_v11, %v754_v53  ;;  %v838_v12 = vcombine.high %v4111_v11, %v754_v53 }
 0x2a6   : > { %v1279_v61 = vrot.slane %v1272_v55, %v4160_v28  ;;  %v1287_v62 = vrot.slane %v3448_v56, %v4160_v28  ;;  %v1295_v63 = vrot.slane %v1288_v57, %v4160_v28  ;;  %v1303_v0 = vrot.slane %v3449_v58, %v4160_v28 }
 0x2a7   : > { %v1211_v3 = vrot.slane %v1203_v59, %v4160_v28  ;;  %v1218_v4 = vrot.slane %v1204_v60, %v4160_v28  ;;  %v4185_v7 = vpop.permute.xlu1 %742  ;;  %v1097_v8 = vpop.permute.xlu0 %1096  ;;  %v845_v33 = vrot.slane %v837_v9, %v4160_v28  ;;  %v852_v44 = vrot.slane %v838_v12, %v4160_v28 }
 0x2a8   : > { %v1304_v14 = vcombine.low %v1279_v61, %v1287_v62  ;;  %v1320_v15 = vcombine.low %v1295_v63, %v1303_v0  ;;  %v1305_v25 = vcombine.high %v1279_v61, %v1287_v62  ;;  %v1321_v26 = vcombine.high %v1295_v63, %v1303_v0 }
 0x2a9   : > { %v1219_v18 = vcombine.low %v1195_v1, %v1211_v3  ;;  %v1220_v19 = vcombine.high %v1195_v1, %v1211_v3  ;;  %v1235_v20 = vcombine.low %v1202_v2, %v1218_v4  ;;  %v1236_v21 = vcombine.high %v1202_v2, %v1218_v4 }
 0x2aa   : > { %v4190_v22 = vrot.slane %v1304_v14, %v4163_v35  ;;  %v4193_v23 = vrot.slane %v1320_v15, %v4163_v35  ;;  %v4206_v46 = vrot.slane %v1305_v25, %v4163_v35  ;;  %v4209_v47 = vrot.slane %v1321_v26, %v4163_v35 }
 0x2ab   : > { %v1227_v27 = vrot.slane %v1219_v18, %v4163_v35  ;;  %v1234_v29 = vrot.slane %v1220_v19, %v4163_v35  ;;  %v1243_v11 = vrot.slane %v1235_v20, %v4163_v35  ;;  %v1250_v30 = vrot.slane %v1236_v21, %v4163_v35  ;;  %v752_v31 = vpop.permute.xlu1 %751  ;;  %v1115_v32 = vpop.permute.xlu0 %1114 }
 0x2ac   : > { %v769_v34 = vcombine.low %v4123_v16, %v752_v31  ;;  %v770_v36 = vcombine.high %v4123_v16, %v752_v31  ;;  %v1263_v38 = vcombine.low %v1097_v8, %v1115_v32  ;;  %v1336_v45 = vcombine.low %v4190_v22, %v4193_v23 }
 0x2ad   : > { %v1340_v39 = vcombine.low %v1227_v27, %v1234_v29  ;;  %v3450_v40 = vcombine.high %v1227_v27, %v1234_v29  ;;  %v1356_v42 = vcombine.low %v1243_v11, %v1250_v30  ;;  %v3451_v43 = vcombine.high %v1243_v11, %v1250_v30 }
 0x2ae   : > { %v777_v53 = vrot.slane %v769_v34, %v4160_v28  ;;  %v784_v57 = vrot.slane %v770_v36, %v4160_v28  ;;  %v1270_v58 = vrot.slane %v1263_v38, %v4160_v28  ;;  %v1338_v0 = vcombine.low %v4206_v46, %v4209_v47 }
 0x2af   : > { %v1347_v48 = vrot.slane %v1340_v39, %v4160_v28  ;;  %v1355_v16 = vrot.slane %v3450_v40, %v4160_v28  ;;  %v1363_v49 = vrot.slane %v1356_v42, %v4160_v28  ;;  %v1371_v50 = vrot.slane %v3451_v43, %v4160_v28  ;;  %v1106_v51 = vpop.permute.xlu1 %1105  ;;  %v763_v52 = vpop.permute.xlu0 %762 }
 0x2b0   : > { %v1255_v54 = vcombine.low %v4113_v13, %v1106_v51  ;;  %v853_v55 = vcombine.low %v4169_v41, %v763_v52  ;;  %v854_v56 = vcombine.high %v4169_v41, %v763_v52  ;;  %v1337_v42 = vcombine.high %v4190_v22, %v4193_v23 }
 0x2b1   : > { %v1372_v59 = vcombine.low %v1347_v48, %v1355_v16  ;;  %v1388_v60 = vcombine.low %v1363_v49, %v1371_v50  ;;  %v1373_v3 = vcombine.high %v1347_v48, %v1355_v16  ;;  %v1389_v4 = vcombine.high %v1363_v49, %v1371_v50 }
 0x2b2   : > { %v1262_v61 = vrot.slane %v1255_v54, %v4160_v28  ;;  %v861_v62 = vrot.slane %v853_v55, %v4160_v28  ;;  %v868_v63 = vrot.slane %v854_v56, %v4160_v28  ;;  %v3914_v49 = vmov 0.0  }
 0x2b3   : > { %v761_v13 = vpop.permute.xlu1 %760  ;;  %v756_v1 = vpop.permute.xlu0 %755  ;;  %v4227_v2 = vrot.slane %v1372_v59, %v4163_v35  ;;  %v4230_v41 = vrot.slane %v1388_v60, %v4163_v35  ;;  %v4251_v36 = vrot.slane %v1389_v4, %v4163_v35 }
 0x2b4   : > { %v1271_v8 = vcombine.low %v1262_v61, %v1270_v58  ;;  %v869_v9 = vcombine.low %v845_v33, %v861_v62  ;;  %v870_v12 = vcombine.high %v845_v33, %v861_v62  ;;  %v885_v14 = vcombine.low %v852_v44, %v868_v63 }
 0x2b5   : > { %v886_v15 = vcombine.high %v852_v44, %v868_v63  ;;  %v785_v18 = vcombine.low %v4185_v7, %v761_v13  ;;  %v786_v19 = vcombine.high %v4185_v7, %v761_v13  ;;  %v905_v20 = vcombine.low %v4137_v17, %v756_v1 }
 0x2b6   : > { %v1414_v21 = vrot.slane %v1271_v8, %v4163_v35  ;;  %v877_v25 = vrot.slane %v869_v9, %v4163_v35  ;;  %v884_v26 = vrot.slane %v870_v12, %v4163_v35  ;;  %v893_v27 = vrot.slane %v885_v14, %v4163_v35 }
 0x2b7   : > { %v900_v29 = vrot.slane %v886_v15, %v4163_v35  ;;  %v793_v11 = vrot.slane %v785_v18, %v4160_v28  ;;  %v800_v30 = vrot.slane %v786_v19, %v4160_v28  ;;  %v747_v31 = vpop.permute.xlu1 %746  ;;  %v4242_v32 = vpop.permute.xlu0 %1442  ;;  %v4245_v7 = vrot.slane %v1373_v3, %v4163_v35 }
 0x2b8   : > { %v1421_v17 = vrot.slane %v1414_v21, %v4160_v28  ;;  %v990_v33 = vcombine.low %v877_v25, %v884_v26  ;;  %v1404_v34 = vcombine.low %v4227_v2, %v4230_v41  ;;  %v3446_v38 = vcombine.high %v877_v25, %v884_v26 }
 0x2b9   : > { %v801_v39 = vcombine.low %v777_v53, %v793_v11  ;;  %v802_v40 = vcombine.high %v777_v53, %v793_v11  ;;  %v1006_v43 = vcombine.low %v893_v27, %v900_v29  ;;  %v3447_v44 = vcombine.high %v893_v27, %v900_v29 }
 0x2ba   : > { %v817_v48 = vcombine.low %v784_v57, %v800_v30  ;;  %v912_v16 = vrot.slane %v905_v20, %v4160_v28  ;;  %v1422_v50 = vcombine.high %v1421_v17, %v3914_v49  ;;  %v4258_v51 = vrot.slane %v990_v33, %v4160_v28 }
 0x2bb   : > { %v809_v52 = vrot.slane %v801_v39, %v4163_v35  ;;  %v816_v54 = vrot.slane %v802_v40, %v4163_v35  ;;  %v765_v55 = vpop.permute.xlu1 %764  ;;  %v818_v53 = vcombine.high %v784_v57, %v800_v30  ;;  %v1797_v58 = vpack.c.bf16 %v1404_v34, %v1336_v45  ;;  %v1461_v60 = vpop.permute.xlu0 %1460 }
 0x2bc   : > { %v825_v56 = vrot.slane %v817_v48, %v4163_v35  ;;  %v1406_v59 = vcombine.low %v4245_v7, %v4251_v36  ;;  %v4269_v61 = vrot.slane %v3446_v38, %v4160_v28  ;;  %v913_v13 = vcombine.low %v747_v31, %v765_v55 }
 0x2bd   : > { %v922_v62 = vcombine.low %v809_v52, %v816_v54  ;;  %v3444_v63 = vcombine.high %v809_v52, %v816_v54  ;;  %v4272_v1 = vrot.slane %v1006_v43, %v4160_v28  ;;  %v832_v57 = vrot.slane %v818_v53, %v4163_v35  ;;  %3706 = vmatprep.subr.msk.bf16.mxu1 %vm1805_vm1, %v1797_v58 }
 0x2be   : > { %v1801_v3 = vpack.c.bf16 %v1406_v59, %v1338_v0  ;;  %v1813_v22 = vsel %vm1805_vm1, %v1797_v58, 0  ;;  %v920_v4 = vrot.slane %v913_v13, %v4160_v28  ;;  %v1485_v8 = vcombine.low %v4242_v32, %v1461_v60 }
 0x2bf   : > { %v4278_v23 = vrot.slane %v922_v62, %v4160_v28  ;;  %v937_v45 = vrot.slane %v3444_v63, %v4160_v28  ;;  %3623 = vmatpush3.bf16.xpose.msra.mxu1 %v1813_v22  ;;  %v4283_v9 = vpop.permute.xlu1 %1444  ;;  %v938_v12 = vcombine.low %v825_v56, %v832_v57  ;;  %v3445_v14 = vcombine.high %v825_v56, %v832_v57 }
 0x2c0   : > { %3710 = vmatprep.subr.msk.bf16.mxu0 %vm1805_vm1, %v1801_v3  ;;  %v1933_v0 = vsel %vm1805_vm1, %v1801_v3, 0  ;;  %v1486_v15 = vcombine.high %v4242_v32, %v1461_v60  ;;  %v921_v18 = vcombine.low %v912_v16, %v920_v4  ;;  %v1429_v19 = vrot.slane %v1421_v17, %v4163_v35 }
 0x2c1   : > { %3639 = vmatpush3.bf16.xpose.msra.mxu0 %v1933_v0  ;;  %v4290_v20 = vrot.slane %v1422_v50, %v4163_v35  ;;  %v1405_v21 = vcombine.high %v4227_v2, %v4230_v41  ;;  %v4295_v25 = vrot.slane %v3447_v44, %v4160_v28  ;;  %v945_v26 = vrot.slane %v938_v12, %v4160_v28 }
 0x2c2   : > { %v953_v27 = vrot.slane %v3445_v14, %v4160_v28  ;;  %v954_v29 = vcombine.low %v4278_v23, %v937_v45  ;;  %v1064_v11 = vrot.slane %v921_v18, %v4163_v35  ;;  %v1798_v30 = vpack.c.bf16 %v1429_v19, %v1429_v19 }
 0x2c3   : > { %v1802_v31 = vpack.c.bf16 %v4290_v20, %v4290_v20  ;;  %v1799_v32 = vpack.c.bf16 %v1405_v21, %v1337_v42  ;;  %v1452_v17 = vpop.permute.xlu1 %1451  ;;  %v1493_v33 = vrot.slane %v1485_v8, %v4160_v28  ;;  %v1500_v39 = vrot.slane %v1486_v15, %v4160_v28 }
 0x2c4   : > { %v1469_v2 = vcombine.low %v4100_v6, %v1452_v17  ;;  %v1470_v41 = vcombine.high %v4100_v6, %v1452_v17  ;;  %v970_v34 = vcombine.low %v945_v26, %v953_v27  ;;  %v1071_v38 = vrot.slane %v1064_v11, %v4160_v28  ;;  %3707 = vmatprep.subr.msk.bf16.mxu1 %vm1805_vm1, %v1798_v30 }
 0x2c5   : > { %3711 = vmatprep.subr.msk.bf16.mxu0 %vm1805_vm1, %v1802_v31  ;;  %v1022_v40 = vcombine.low %v4258_v51, %v4269_v61  ;;  %v1816_v42 = vsel %vm1805_vm1, %v1798_v30, 0  ;;  %v1936_v43 = vsel %vm1805_vm1, %v1802_v31, 0  ;;  %v962_v48 = vrot.slane %v954_v29, %v4163_v35 }
 0x2c6   : > { %v1477_v44 = vrot.slane %v1469_v2, %v4160_v28  ;;  %v1484_v6 = vrot.slane %v1470_v41, %v4160_v28  ;;  %v978_v16 = vrot.slane %v970_v34, %v4163_v35  ;;  %v1038_v50 = vcombine.low %v4272_v1, %v4295_v25 }
 0x2c7   : > { %3625 = vmatpush3.bf16.xpose.msra.mxu1 %v1816_v42  ;;  %v1072_v56 = vcombine.high %v1071_v38, %v3914_v49  ;;  %v1030_v58 = vrot.slane %v1022_v40, %v4163_v35  ;;  %v955_v59 = vcombine.high %v4278_v23, %v937_v45  ;;  %v971_v60 = vcombine.high %v945_v26, %v953_v27 }
 0x2c8   : > { %3708 = vmatprep.subr.msk.bf16.mxu1 %vm1805_vm1, %v1799_v32  ;;  %v1501_v52 = vcombine.low %v1477_v44, %v1493_v33  ;;  %v1502_v54 = vcombine.high %v1477_v44, %v1493_v33  ;;  %v1517_v55 = vcombine.low %v1484_v6, %v1500_v39  ;;  %v1518_v53 = vcombine.high %v1484_v6, %v1500_v39 }
 0x2c9   : > { %3641 = vmatpush3.bf16.xpose.msra.mxu0 %v1936_v43  ;;  %v986_v3 = vcombine.low %v962_v48, %v978_v16  ;;  %v1046_v22 = vrot.slane %v1038_v50, %v4163_v35  ;;  %v1079_v4 = vrot.slane %v1071_v38, %v4163_v35  ;;  %v969_v0 = vrot.slane %v955_v59, %v4163_v35 }
 0x2ca   : > { %v1509_v62 = vrot.slane %v1501_v52, %v4163_v35  ;;  %v1516_v63 = vrot.slane %v1502_v54, %v4163_v35  ;;  %v1525_v13 = vrot.slane %v1517_v55, %v4163_v35  ;;  %v1532_v57 = vrot.slane %v1518_v53, %v4163_v35 }
 0x2cb   : > { %v1054_v14 = vcombine.low %v1030_v58, %v1046_v22  ;;  %v985_v23 = vrot.slane %v971_v60, %v4163_v35  ;;  %v1023_v45 = vcombine.high %v4258_v51, %v4269_v61  ;;  %v1086_v15 = vrot.slane %v1072_v56, %v4163_v35 }
 0x2cc   : > { %v1622_v8 = vcombine.low %v1509_v62, %v1516_v63  ;;  %v3452_v12 = vcombine.high %v1509_v62, %v1516_v63  ;;  %v1638_v18 = vcombine.low %v1525_v13, %v1532_v57  ;;  %v3453_v21 = vcombine.high %v1525_v13, %v1532_v57 }
 0x2cd   : > { %v1339_v26 = vcombine.high %v4206_v46, %v4209_v47  ;;  %v1789_v29 = vpack.c.bf16 %v1054_v14, %v986_v3  ;;  %v1037_v11 = vrot.slane %v1023_v45, %v4163_v35  ;;  %v1039_v30 = vcombine.high %v4272_v1, %v4295_v25 }
 0x2ce   : > { %v4338_v27 = vrot.slane %v1622_v8, %v4160_v28  ;;  %v4344_v31 = vrot.slane %v3452_v12, %v4160_v28  ;;  %v1790_v51 = vpack.c.bf16 %v1079_v4, %v1079_v4  ;;  %v1437_v61 = vcombine.high %v1429_v19, %v3914_v49 }
 0x2cf   : > { %v987_v17 = vcombine.high %v962_v48, %v978_v16  ;;  %3626 = vmatprep.mubr.msk.bf16.mxu1 %vm1805_vm1, %v1789_v29  ;;  %v988_v33 = vcombine.low %v969_v0, %v985_v23  ;;  %v1053_v46 = vrot.slane %v1039_v30, %v4163_v35  ;;  %v1055_v47 = vcombine.high %v1030_v58, %v1046_v22 }
 0x2d0   : > { %v1407_v2 = vcombine.high %v4245_v7, %v4251_v36  ;;  %v4352_v41 = vrot.slane %v1638_v18, %v4160_v28  ;;  %v4355_v1 = vrot.slane %v3453_v21, %v4160_v28  ;;  %3627 = vmatmul.mubr.msk.bf16.vlgmr.msra.gmra.mrb[4].mxu1 %vm1805_vm1, %v1790_v51  ;;  %v1873_v19 = vsel %vm1805_vm1, %v1799_v32, 0 }
 0x2d1   : > { %v1800_v25 = vpack.c.bf16 %v1437_v61, %v1437_v61  ;;  %v1056_v34 = vcombine.low %v1037_v11, %v1053_v46  ;;  %3631 = vmatpush3.bf16.xpose.msra.mxu1 %v1873_v19  ;;  %v1791_v38 = vpack.c.bf16 %v1055_v47, %v987_v17  ;;  %v1794_v40 = vpack.c.bf16 %v1086_v15, %v1086_v15 }
 0x2d2   : > { %v1803_v39 = vpack.c.bf16 %v1407_v2, %v1339_v26  ;;  %v1655_v7 = vcombine.high %v4338_v27, %v4344_v31  ;;  %v1671_v36 = vcombine.high %v4352_v41, %v4355_v1  ;;  %v1087_v16 = vcombine.high %v1079_v4, %v3914_v49 }
 0x2d3   : > { %3709 = vmatprep.subr.msk.bf16.mxu1 %vm1805_vm1, %v1800_v25  ;;  %v1793_v42 = vpack.c.bf16 %v1056_v34, %v988_v33  ;;  %3634 = vmatprep.mubr.msk.bf16.mxu1 %vm1805_vm1, %v1791_v38  ;;  %v1876_v44 = vsel %vm1805_vm1, %v1800_v25, 0  ;;  %v989_v50 = vcombine.high %v969_v0, %v985_v23  ;;  %v1438_v52 = vcombine.high %v4290_v20, %v3914_v49  ;;  %v1454_v25 = vpop.permute.xlu1 %1453 }
 0x2d4   : > { %v4368_v32 = vrot.slane %v1655_v7, %v4163_v35  ;;  %v4371_v43 = vrot.slane %v1671_v36, %v4163_v35  ;;  %v1057_v54 = vcombine.high %v1037_v11, %v1053_v46  ;;  %v1792_v55 = vpack.c.bf16 %v1087_v16, %v1087_v16 }
 0x2d5   : > { %3642 = vmatprep.mubr.msk.bf16.mxu0 %vm1805_vm1, %v1793_v42  ;;  %v1993_v56 = vsel %vm1805_vm1, %v1803_v39, 0  ;;  %v1804_v58 = vpack.c.bf16 %v1438_v52, %v1438_v52  ;;  %v1088_v60 = vcombine.high %v1086_v15, %v3914_v49 }
 0x2d6   : > { %3643 = vmatmul.mubr.msk.bf16.vlgmr.msra.gmra.mrb[8].mxu0 %vm1805_vm1, %v1794_v40  ;;  %v1688_v6 = vcombine.low %v4368_v32, %v4371_v43  ;;  %v1689_v48 = vcombine.high %v4368_v32, %v4371_v43  ;;  %v1795_v53 = vpack.c.bf16 %v1057_v54, %v989_v50 }
 0x2d7   : > { %v1996_v59 = vsel %vm1805_vm1, %v1804_v58, 0  ;;  %v1796_v62 = vpack.c.bf16 %v1088_v60, %v1088_v60 }
 0x2d9   : > { %3633 = vmatpush3.bf16.xpose.msra.mxu1 %v1876_v44 }
 0x2da   : > { %3712 = vmatprep.subr.msk.bf16.mxu1 %vm1805_vm1, %v1803_v39 }
 0x2e0   : > { %3635 = vmatmul.mubr.msk.bf16.vlgmr.msra.gmra.mrb[8].mxu1 %vm1805_vm1, %v1792_v55 }
 0x2e1   : > { %3647 = vmatpush3.bf16.xpose.msra.mxu1 %v1993_v56  ;;  %3650 = vmatprep.mubr.msk.bf16.mxu1 %vm1805_vm1, %v1795_v53 }
 0x2e2   : > { %3713 = vmatprep.subr.msk.bf16.mxu1 %vm1805_vm1, %v1804_v58 }
 0x2e9   : > { %3649 = vmatpush3.bf16.xpose.msra.mxu1 %v1996_v59 }
 0x2f0   : > { %3651 = vmatmul.mubr.msk.bf16.vlgmr.msra.gmra.mrb[12].mxu1 %vm1805_vm1, %v1796_v62 }
 0x3a3   : > { %v3628_v20 = vpop.f32.mrb[4].mxu1 }
 0x3a4   : > { %v1852_v63 = vpop.f32.mrb[5].mxu1  ;;  %v2054_v13 = vsel %vm2053_vm2, %v3628_v20, -inf }
 0x3a5   : > { %2055 = vmax.xlane.f32.xlu0 %v2054_v13  ;;  %v3629_v57 = vpop.f32.mrb[6].mxu1  ;;  %v2047_v45 = vsel %vm2046_vm3, %v1852_v63, -inf }
 0x3a6   : > { %v1855_v3 = vpop.f32.mrb[7].mxu1 }
 0x3a7   : > { %v2050_v22 = vsel %vm2046_vm3, %v1855_v3, -inf }
 0x3a8   : > { %2051 = vmax.xlane.f32.xlu1 %v2050_v22 }
 0x3a9   : > { %v4391_v4 = vpop.f32.mrb[8].mxu0 }
 0x3aa   : > { %v4393_v8 = vpop.f32.mrb[9].mxu0  ;;  %v2072_v12 = vsel %vm2053_vm2, %v4391_v4, -inf }
 0x3ab   : > { %v3645_v14 = vpop.f32.mrb[10].mxu0  ;;  %2073 = vmax.xlane.f32.xlu0 %v2072_v12  ;;  %v2066_v15 = vsel %vm2046_vm3, %v4393_v8, -inf }
 0x3ac   : > { %v4397_v0 = vpop.f32.mrb[11].mxu0 }
 0x3ad   : > { %v2069_v23 = vsel %vm2046_vm3, %v4397_v0, -inf }
 0x3ae   : > { %2070 = vmax.xlane.f32.xlu1 %v2069_v23 }
 0x3af   : > { %2048 = vmax.xlane.f32.xlu0 %v2047_v45 }
 0x3b3   : > { %2067 = vmax.xlane.f32.xlu0 %v2066_v15  ;;  %v3636_v18 = vpop.f32.mrb[8].mxu1 }
 0x3b4   : > { %v1912_v21 = vpop.f32.mrb[9].mxu1  ;;  %v2063_v26 = vsel %vm2053_vm2, %v3636_v18, -inf }
 0x3b5   : > { %v3637_v29 = vpop.f32.mrb[10].mxu1  ;;  %2064 = vmax.xlane.f32.xlu1 %v2063_v26  ;;  %v2057_v11 = vsel %vm2046_vm3, %v1912_v21, -inf }
 0x3b6   : > { %v1915_v30 = vpop.f32.mrb[11].mxu1 }
 0x3b7   : > { %2058 = vmax.xlane.f32.xlu0 %v2057_v11  ;;  %v2060_v51 = vsel %vm2046_vm3, %v1915_v30, -inf }
 0x3bb   : > { %2061 = vmax.xlane.f32.xlu0 %v2060_v51  ;;  %v1537_v51 = vcombine.low %v4106_v10, %v1454_v25 }
 0x3c3   : > { %v4407_v61 = vpop.f32.mrb[12].mxu1 }
 0x3c4   : > { %v4409_v17 = vpop.f32.mrb[13].mxu1  ;;  %v2081_v33 = vsel %vm2053_vm2, %v4407_v61, -inf }
 0x3c5   : > { %v3653_v46 = vpop.f32.mrb[14].mxu1  ;;  %2082 = vmax.xlane.f32.xlu1 %v2081_v33  ;;  %v2075_v47 = vsel %vm2046_vm3, %v4409_v17, -inf  ;;  %v1538_v33 = vcombine.high %v4106_v10, %v1454_v25 }
 0x3c6   : > { %v4415_v2 = vpop.f32.mrb[15].mxu1  ;;  %2076 = vmax.xlane.f32.xlu0 %v2075_v47 }
 0x3c7   : > { %v2078_v19 = vsel %vm2046_vm3, %v4415_v2, -inf }
 0x3c9   : > { %2079 = vmax.xlane.f32.xlu1 %v2078_v19 }
 0x3da   : > { %1462 = vrot.lane.b32.xlu1 %v4106_v10, %s3911_s24 }
 0x3dc   : > { %1446 = vrot.lane.b32.xlu0 %v4098_v5, %s3910_s20 }
 0x432   : > { %v2056_v34 = vpop.xlane.xlu0 %2055 }
 0x433   : > { %v2086_v38 = vsub.f32 %v3628_v20, %v2056_v34  ;;  %v1545_v34 = vrot.slane %v1537_v51, %v4160_v28 }
 0x435   : > { %v2100_v39 = vmul.f32 1.442695, %v2086_v38  ;;  %v2052_v40 = vpop.xlane.xlu1 %2051  ;;  %v1552_v38 = vrot.slane %v1538_v33, %v4160_v28 }
 0x436   : > { %v2085_v42 = vsub.f32 %v1855_v3, %v2052_v40 }
 0x437   : > { %3831 = vpow2.f32 %v2100_v39 }
 0x438   : > { %v2098_v7 = vmul.f32 1.442695, %v2085_v42  ;;  %v4423_v36 = vpop.xlane.xlu0 %2073 }
 0x439   : > { %v2092_v44 = vsub.f32 %v4391_v4, %v4423_v36 }
 0x43a   : > { %3833 = vpow2.f32 %v2098_v7 }
 0x43b   : > { %v4427_v52 = vpop.xlane.xlu1 %2070  ;;  %v2112_v43 = vmul.f32 1.442695, %v2092_v44 }
 0x43c   : > { %v2049_v16 = vpop.xlane.xlu0 %2048 }
 0x43d   : > { %v2084_v50 = vsub.f32 %v1852_v63, %v2049_v16 }
 0x43f   : > { %v2096_v54 = vmul.f32 1.442695, %v2084_v50 }
 0x440   : > { %v4429_v55 = vpop.xlane.xlu0 %2067 }
 0x441   : > { %v4431_v53 = vpop.eup %3831  ;;  %3835 = vpow2.f32 %v2096_v54 }
 0x442   : > { %v2065_v56 = vpop.xlane.xlu1 %2064  ;;  %v2126_v58 = vsel %vm2053_vm2, %v4431_v53, 0.0 }
 0x443   : > { %v2089_v59 = vsub.f32 %v3636_v18, %v2065_v56  ;;  %2127 = vadd.xlane.f32.xlu0 %v2126_v58  ;;  %v1654_v56 = vcombine.low %v4338_v27, %v4344_v31  ;;  %v1670_v58 = vcombine.low %v4352_v41, %v4355_v1 }
 0x444   : > { %v4435_v60 = vpop.eup %3833  ;;  %v2059_v62 = vpop.xlane.xlu0 %2058 }
 0x445   : > { %v2106_v20 = vmul.f32 1.442695, %v2089_v59  ;;  %v2087_v13 = vsub.f32 %v1912_v21, %v2059_v62  ;;  %v2123_v63 = vsel %vm2046_vm3, %v4435_v60, 0.0 }
 0x446   : > { %2124 = vadd.xlane.f32.xlu1 %v2123_v63 }
 0x447   : > { %3837 = vpow2.f32 %v2106_v20  ;;  %v2102_v57 = vmul.f32 1.442695, %v2087_v13 }
 0x448   : > { %v2062_v3 = vpop.xlane.xlu0 %2061 }
 0x449   : > { %3839 = vpow2.f32 %v2102_v57  ;;  %v2088_v22 = vsub.f32 %v1915_v30, %v2062_v3 }
 0x44b   : > { %v4439_v12 = vpop.eup %3835  ;;  %v2104_v14 = vmul.f32 1.442695, %v2088_v22 }
 0x44c   : > { %v2120_v23 = vsel %vm2046_vm3, %v4439_v12, 0.0 }
 0x44d   : > { %3841 = vpow2.f32 %v2104_v14  ;;  %2121 = vadd.xlane.f32.xlu0 %v2120_v23  ;;  %v1662_v14 = vrot.slane %v1654_v56, %v4163_v35  ;;  %v1678_v23 = vrot.slane %v1670_v58, %v4163_v35 }
 0x44f   : > { %v1686_v33 = vcombine.low %v1662_v14, %v1678_v23 }
 0x451   : > { %v4443_v45 = vpop.eup %3837 }
 0x452   : > { %v4445_v15 = vpop.xlane.xlu1 %2082  ;;  %v2135_v18 = vsel %vm2053_vm2, %v4443_v45, 0.0 }
 0x453   : > { %v4449_v21 = vpop.eup %3839  ;;  %2136 = vadd.xlane.f32.xlu1 %v2135_v18 }
 0x454   : > { %v2129_v26 = vsel %vm2046_vm3, %v4449_v21, 0.0 }
 0x455   : > { %2130 = vadd.xlane.f32.xlu0 %v2129_v26 }
 0x456   : > { %v4453_v29 = vpop.xlane.xlu1 %2079 }
 0x457   : > { %v4455_v11 = vpop.eup %3841  ;;  %v2094_v32 = vsub.f32 %v4415_v2, %v4453_v29 }
 0x458   : > { %v2132_v30 = vsel %vm2046_vm3, %v4455_v11, 0.0 }
 0x459   : > { %2133 = vadd.xlane.f32.xlu1 %v2132_v30 }
 0x45a   : > { %v1463_v46 = vpop.permute.xlu1 %1462 }
 0x45b   : > { %v1553_v47 = vcombine.low %v4283_v9, %v1463_v46  ;;  %v1554_v19 = vcombine.high %v4283_v9, %v1463_v46  ;;  %v1687_v46 = vcombine.high %v1662_v14, %v1678_v23 }
 0x45d   : > { %v1561_v39 = vrot.slane %v1553_v47, %v4160_v28  ;;  %v1568_v40 = vrot.slane %v1554_v19, %v4160_v28 }
 0x45f   : > { %v1569_v42 = vcombine.low %v1545_v34, %v1561_v39  ;;  %v1570_v7 = vcombine.high %v1545_v34, %v1561_v39  ;;  %v1585_v16 = vcombine.low %v1552_v38, %v1568_v40  ;;  %v1586_v50 = vcombine.high %v1552_v38, %v1568_v40 }
 0x461   : > { %v1577_v10 = vrot.slane %v1569_v42, %v4163_v35  ;;  %v1584_v25 = vrot.slane %v1570_v7, %v4163_v35  ;;  %v1593_v54 = vrot.slane %v1585_v16, %v4163_v35  ;;  %v1600_v9 = vrot.slane %v1586_v50, %v4163_v35  ;;  %v2077_v50 = vpop.xlane.xlu0 %2076 }
 0x462   : > { %v2091_v16 = vsub.f32 %v4397_v0, %v4427_v52  ;;  %v2116_v0 = vmul.f32 1.442695, %v2094_v32 }
 0x463   : > { %v1690_v59 = vcombine.low %v1577_v10, %v1584_v25  ;;  %v3454_v62 = vcombine.high %v1577_v10, %v1584_v25  ;;  %v1706_v20 = vcombine.low %v1593_v54, %v1600_v9  ;;  %v3455_v13 = vcombine.high %v1593_v54, %v1600_v9 }
 0x464   : > { %v2090_v10 = vsub.f32 %v4393_v8, %v4429_v55  ;;  %v2110_v25 = vmul.f32 1.442695, %v2091_v16  ;;  %v2203_v16 = vsel %vm424_vm0, 65535, %v3908_v37 }
 0x465   : > { %v1697_v63 = vrot.slane %v1690_v59, %v4160_v28  ;;  %v1705_v57 = vrot.slane %v3454_v62, %v4160_v28  ;;  %v1713_v3 = vrot.slane %v1706_v20, %v4160_v28  ;;  %v1721_v22 = vrot.slane %v3455_v13, %v4160_v28  ;;  %v1447_v59 = vpop.permute.xlu0 %1446 }
 0x466   : > { %v2108_v54 = vmul.f32 1.442695, %v2090_v10  ;;  %3843 = vpow2.f32 %v2110_v25 }
 0x467   : > { %v1722_v27 = vcombine.low %v1697_v63, %v1705_v57  ;;  %v1738_v31 = vcombine.low %v1713_v3, %v1721_v22  ;;  %v1723_v18 = vcombine.high %v1697_v63, %v1705_v57  ;;  %v1739_v41 = vcombine.high %v1713_v3, %v1721_v22 }
 0x468   : > { %3845 = vpow2.f32 %v2108_v54 }
 0x469   : > { %v1730_v1 = vrot.slane %v1722_v27, %v4163_v35  ;;  %v1746_v26 = vrot.slane %v1738_v31, %v4163_v35  ;;  %v1737_v30 = vrot.slane %v1723_v18, %v4163_v35  ;;  %v1753_v51 = vrot.slane %v1739_v41, %v4163_v35 }
 0x46a   : > { %1455 = vrot.lane.b32.xlu1 %v4098_v5, %s3909_s19 }
 0x46b   : > { %1464 = vrot.lane.b32.xlu0 %v4098_v5, %s3911_s24  ;;  %v1754_v47 = vcombine.low %v1730_v1, %v1746_v26  ;;  %v1755_v19 = vcombine.high %v1730_v1, %v1746_v26  ;;  %v1756_v34 = vcombine.low %v1737_v30, %v1753_v51  ;;  %v1757_v38 = vcombine.high %v1737_v30, %v1753_v51 }
 0x46d   : > { %v2188_v39 = vpack.c.bf16 %v1754_v47, %v1686_v33  ;;  %v2190_v40 = vpack.c.bf16 %v1755_v19, %v1687_v46  ;;  %v4492_v42 = vpack.c.bf16 %v1756_v34, %v1688_v6  ;;  %v4497_v7 = vpack.c.bf16 %v1757_v38, %v1689_v48 }
 0x46e   : > { %v2093_v6 = vsub.f32 %v4409_v17, %v2077_v50  ;;  %v2095_v48 = vsub.f32 %v4407_v61, %v4445_v15 }
 0x46f   : > { %3654 = vmatprep.subr.bf16.mxu0 %v2188_v39  ;;  %3662 = vmatprep.subr.bf16.mxu1 %v2190_v40 }
 0x470   : > { %3655 = vmatpush3.bf16.msra.mxu0 %v2188_v39  ;;  %3663 = vmatpush3.bf16.msra.mxu1 %v2190_v40  ;;  %v2114_v9 = vmul.f32 1.442695, %v2093_v6  ;;  %v2118_v8 = vmul.f32 1.442695, %v2095_v48  ;;  %v4511_v17 = vpop.eup %3843 }
 0x471   : > { %v2141_v2 = vsel %vm2046_vm3, %v4511_v17, 0.0 }
 0x472   : > { %3847 = vpow2.f32 %v2114_v9  ;;  %v4513_v52 = vpop.eup %3845 }
 0x473   : > { %3849 = vpow2.f32 %v2112_v43  ;;  %v2138_v36 = vsel %vm2046_vm3, %v4513_v52, 0.0 }
 0x474   : > { %3851 = vpow2.f32 %v2116_v0 }
 0x475   : > { %3853 = vpow2.f32 %v2118_v8 }
 0x47c   : > { %v4517_v55 = vpop.eup %3847 }
 0x47d   : > { %v4519_v4 = vpop.eup %3849  ;;  %v2147_v61 = vsel %vm2046_vm3, %v4517_v55, 0.0 }
 0x47e   : > { %v4525_v44 = vpop.eup %3851  ;;  %v2144_v15 = vsel %vm2053_vm2, %v4519_v4, 0.0 }
 0x47f   : > { %v2150_v29 = vsel %vm2046_vm3, %v4525_v44, 0.0  ;;  %v4531_v56 = vpop.eup %3853 }
 0x480   : > { %v2153_v58 = vsel %vm2053_vm2, %v4531_v56, 0.0 }
 0x48a   : > { %2142 = vadd.xlane.f32.xlu0 %v2141_v2 }
 0x48e   : > { %2148 = vadd.xlane.f32.xlu0 %v2147_v61  ;;  %2139 = vadd.xlane.f32.xlu1 %v2138_v36 }
 0x492   : > { %2145 = vadd.xlane.f32.xlu1 %v2144_v15  ;;  %2151 = vadd.xlane.f32.xlu0 %v2150_v29 }
 0x496   : > { %2154 = vadd.xlane.f32.xlu0 %v2153_v58 }
 0x4d0   : > { %v2128_v62 = vpop.xlane.xlu0 %2127 }
 0x4d3   : > { %v2125_v20 = vpop.xlane.xlu1 %2124 }
 0x4d4   : > { %3855 = vrcp.f32 %v2125_v20 }
 0x4da   : > { %v2122_v13 = vpop.xlane.xlu0 %2121 }
 0x4db   : > { %3857 = vrcp.f32 %v2122_v13 }
 0x4de   : > { %v3856_v3 = vpop.eup %3855 }
 0x4df   : > { %v2169_v31 = vmul.f32 %v3856_v3, %v4435_v60 }
 0x4e0   : > { %v2137_v63 = vpop.xlane.xlu1 %2136 }
 0x4e2   : > { %v2131_v57 = vpop.xlane.xlu0 %2130 }
 0x4e3   : > { %3859 = vrcp.f32 %v2131_v57 }
 0x4e5   : > { %v3858_v22 = vpop.eup %3857 }
 0x4e6   : > { %v1465_v14 = vpop.permute.xlu0 %1464  ;;  %v2134_v23 = vpop.xlane.xlu1 %2133  ;;  %v2168_v27 = vmul.f32 %v3858_v22, %v4439_v12 }
 0x4e7   : > { %3861 = vrcp.f32 %v2134_v23  ;;  %v1613_v41 = vcombine.low %v1447_v59, %v1465_v14 }
 0x4e8   : > { %v2180_v18 = vpack.c.bf16 %v2169_v31, %v2168_v27  ;;  %3863 = vrcp.f32 %v2128_v62 }
 0x4e9   : > { %v1620_v30 = vrot.slane %v1613_v41, %v4160_v28  ;;  %3865 = vrcp.f32 %v2137_v63 }
 0x4ea   : > { %3658 = vmatprep.mubr.msk.bf16.mxu0 %vm2046_vm3, %v2180_v18  ;;  %v1456_v1 = vpop.permute.xlu1 %1455 }
 0x4eb   : > { %v1605_v26 = vcombine.low %v4098_v5, %v1456_v1 }
 0x4ed   : > { %v1612_v51 = vrot.slane %v1605_v26, %v4160_v28  ;;  %v3860_v33 = vpop.eup %3859 }
 0x4ee   : > { %v2171_v60 = vmul.f32 %v3860_v33, %v4449_v21 }
 0x4ef   : > { %v1621_v46 = vcombine.low %v1612_v51, %v1620_v30 }
 0x4f1   : > { %v3862_v47 = vpop.eup %3861  ;;  %v1764_v12 = vrot.slane %v1621_v46, %v4163_v35 }
 0x4f2   : > { %v2172_v19 = vmul.f32 %v3862_v47, %v4455_v11  ;;  %v3864_v40 = vpop.eup %3863 }
 0x4f3   : > { %v1771_v34 = vrot.slane %v1764_v12, %v4160_v28  ;;  %v3866_v25 = vpop.eup %3865  ;;  %v2170_v11 = vmul.f32 %v3864_v40, %v4431_v53 }
 0x4f4   : > { %v2182_v38 = vpack.c.bf16 %v2172_v19, %v2171_v60  ;;  %v2173_v32 = vmul.f32 %v3866_v25, %v4443_v45 }
 0x4f5   : > { %v1779_v5 = vrot.slane %v1771_v34, %v4163_v35  ;;  %v1772_v39 = vcombine.high %v1771_v34, %v3914_v49  ;;  %v2181_v0 = vpack.c.bf16 %v2170_v11, %v2170_v11 }
 0x4f6   : > { %3666 = vmatprep.mubr.msk.bf16.mxu1 %vm2046_vm3, %v2182_v38  ;;  %v2183_v53 = vpack.c.bf16 %v2173_v32, %v2173_v32 }
 0x4f7   : > { %v2189_v50 = vpack.c.bf16 %v1779_v5, %v1779_v5  ;;  %v1787_v10 = vcombine.high %v1779_v5, %v3914_v49  ;;  %v1786_v21 = vrot.slane %v1772_v39, %v4163_v35 }
 0x4f9   : > { %v2205_v6 = vand.u32 %v2203_v16, %v2189_v50  ;;  %v2191_v54 = vpack.c.bf16 %v1787_v10, %v1787_v10  ;;  %v1788_v9 = vcombine.high %v1786_v21, %v3914_v49  ;;  %v2193_v48 = vpack.c.bf16 %v1786_v21, %v1786_v21 }
 0x4fb   : > { %3656 = vmatprep.subr.bf16.mxu0 %v2205_v6  ;;  %v2262_v43 = vand.u32 %v2203_v16, %v2191_v54  ;;  %v2195_v8 = vpack.c.bf16 %v1788_v9, %v1788_v9  ;;  %v2319_v2 = vand.u32 %v2203_v16, %v2193_v48 }
 0x4fc   : > { %3657 = vmatpush3.bf16.msra.mxu0 %v2205_v6 }
 0x4fd   : > { %3664 = vmatprep.subr.bf16.mxu1 %v2262_v43  ;;  %3670 = vmatprep.subr.bf16.mxu0 %v4492_v42  ;;  %v2376_v45 = vand.u32 %v2203_v16, %v2195_v8 }
 0x4fe   : > { %3665 = vmatpush3.bf16.msra.mxu1 %v2262_v43 }
 0x4ff   : > { %3659 = vmatmul.mubr.msk.bf16.vlgmr.msra.gmra.mrb[12].mxu0 %vm2046_vm3, %v2181_v0  ;;  %3678 = vmatprep.subr.bf16.mxu1 %v4497_v7 }
 0x500   : > { %3671 = vmatpush3.bf16.msra.mxu0 %v4492_v42 }
 0x501   : > { %3667 = vmatmul.mubr.msk.bf16.vlgmr.msra.gmra.mrb[16].mxu1 %vm2046_vm3, %v2183_v53  ;;  %3672 = vmatprep.subr.bf16.mxu0 %v2319_v2 }
 0x502   : > { %3679 = vmatpush3.bf16.msra.mxu1 %v4497_v7 }
 0x503   : > { %3680 = vmatprep.subr.bf16.mxu1 %v2376_v45 }
 0x504   : > { %3673 = vmatpush3.bf16.msra.mxu0 %v2319_v2 }
 0x506   : > { %3681 = vmatpush3.bf16.msra.mxu1 %v2376_v45 }
 0x517   : > { %v2143_v61 = vpop.xlane.xlu0 %2142 }
 0x518   : > { %3867 = vrcp.f32 %v2143_v61 }
 0x51b   : > { %v2149_v36 = vpop.xlane.xlu0 %2148  ;;  %v2140_v15 = vpop.xlane.xlu1 %2139 }
 0x51c   : > { %3869 = vrcp.f32 %v2140_v15 }
 0x51d   : > { %3871 = vrcp.f32 %v2149_v36 }
 0x51f   : > { %v2152_v29 = vpop.xlane.xlu0 %2151  ;;  %v2146_v58 = vpop.xlane.xlu1 %2145 }
 0x520   : > { %3873 = vrcp.f32 %v2152_v29  ;;  %v3780_v29 = vld [vmem:[%s4792_s4 + $0x18] sm:$0xff]  }
 0x521   : > { %3875 = vrcp.f32 %v2146_v58 }
 0x522   : > { %v3868_v59 = vpop.eup %3867 }
 0x523   : > { %v2155_v42 = vpop.xlane.xlu0 %2154  ;;  %v2175_v13 = vmul.f32 %v3868_v59, %v4511_v17 }
 0x524   : > { %3877 = vrcp.f32 %v2155_v42 }
 0x526   : > { %v3870_v62 = vpop.eup %3869 }
 0x527   : > { %v3872_v20 = vpop.eup %3871  ;;  %v2174_v7 = vmul.f32 %v3870_v62, %v4513_v52  ;;  %v3777_v52 = vld [vmem:[%s4792_s4] sm:$0xff]  }
 0x528   : > { %v2177_v22 = vmul.f32 %v3872_v20, %v4517_v55  ;;  %v3778_v55 = vld [vmem:[%s4792_s4 + $0x8] sm:$0xff]   ;;  %3686 = vmatprep.subr.bf16.mxu0 %v3777_v52 }
 0x529   : > { %v2184_v57 = vpack.c.bf16 %v2175_v13, %v2174_v7 }
 0x52a   : > { %v3874_v63 = vpop.eup %3873 }
 0x52b   : > { %v3876_v3 = vpop.eup %3875  ;;  %v2178_v14 = vmul.f32 %v3874_v63, %v4525_v44  ;;  %3674 = vmatprep.mubr.msk.bf16.mxu0 %vm2046_vm3, %v2184_v57 }
 0x52c   : > { %v2176_v23 = vmul.f32 %v3876_v3, %v4519_v4  ;;  %v3779_v4 = vld [vmem:[%s4792_s4 + $0x10] sm:$0xff]  }
 0x52d   : > { %v2186_v27 = vpack.c.bf16 %v2178_v14, %v2177_v22 }
 0x52e   : > { %v3878_v31 = vpop.eup %3877  ;;  %v2185_v18 = vpack.c.bf16 %v2176_v23, %v2176_v23 }
 0x52f   : > { %v2179_v41 = vmul.f32 %v3878_v31, %v4531_v56  ;;  %3682 = vmatprep.mubr.msk.bf16.mxu1 %vm2046_vm3, %v2186_v27 }
 0x530   : > { %3675 = vmatmul.mubr.msk.bf16.vlgmr.msra.gmra.mrb[16].mxu0 %vm2046_vm3, %v2185_v18 }
 0x531   : > { %v2187_v17 = vpack.c.bf16 %v2179_v41, %v2179_v41  ;;  %3687 = vmatpush3.bf16.msra.mxu0 %v3777_v52  ;;  %v3781_v41 = vld [vmem:[%s4792_s4 + $0x20] sm:$0xff]  }
 0x532   : > { %3688 = vmatprep.subr.bf16.mxu0 %v3778_v55 }
 0x533   : > { %3683 = vmatmul.mubr.msk.bf16.vlgmr.msra.gmra.mrb[20].mxu1 %vm2046_vm3, %v2187_v17 }
 0x534   : > { %3114 = vmatprep.mubr.bf16.mxu1 %v3908_v37 }
 0x535   : > { %3689 = vmatpush3.bf16.msra.mxu0 %v3778_v55 }
 0x536   : > { %3690 = vmatprep.subr.bf16.mxu0 %v3779_v4 }
 0x539   : > { %3691 = vmatpush3.bf16.msra.mxu0 %v3779_v4 }
 0x53a   : > { %3692 = vmatprep.subr.bf16.mxu0 %v3780_v29 }
 0x53d   : > { %3693 = vmatpush3.bf16.msra.mxu0 %v3780_v29 }
 0x53e   : > { %3694 = vmatprep.subr.bf16.mxu0 %v3781_v41 }
 0x541   : > { %3695 = vmatpush3.bf16.msra.mxu0 %v3781_v41 }
 0x5d2   : > { %v3660_v44 = vpop.f32.mrb[12].mxu0 }
 0x5d3   : > { %v2241_v56 = vpop.f32.mrb[13].mxu0 }
 0x5d4   : > { %v3661_v1 = vpop.f32.mrb[14].mxu0  ;;  %v3668_v26 = vpop.f32.mrb[16].mxu1 }
 0x5d5   : > { %v2244_v30 = vpop.f32.mrb[15].mxu0  ;;  %v2298_v51 = vpop.f32.mrb[17].mxu1 }
 0x5d6   : > { %v3669_v33 = vpop.f32.mrb[18].mxu1 }
 0x5d7   : > { %v2301_v46 = vpop.f32.mrb[19].mxu1 }
 0x603   : > { %v3676_v47 = vpop.f32.mrb[16].mxu0 }
 0x604   : > { %v2562_v12 = vcombine.low %v3660_v44, %v3676_v47  ;;  %v2355_v60 = vpop.f32.mrb[17].mxu0 }
 0x605   : > { %v2426_v19 = vcombine.low %v2241_v56, %v2355_v60  ;;  %v2427_v34 = vcombine.high %v2241_v56, %v2355_v60  ;;  %v3677_v38 = vpop.f32.mrb[18].mxu0 }
 0x606   : > { %v2358_v5 = vpop.f32.mrb[19].mxu0  ;;  %v3684_v39 = vpop.f32.mrb[20].mxu1  ;;  %v2569_v6 = vrot.slane %v2562_v12, %v4160_v28 }
 0x607   : > { %v2494_v40 = vcombine.low %v2244_v30, %v2358_v5  ;;  %v2495_v16 = vcombine.high %v2244_v30, %v2358_v5  ;;  %v2412_v50 = vpop.f32.mrb[21].mxu1  ;;  %v2570_v10 = vcombine.low %v3668_v26, %v3684_v39  ;;  %v2434_v54 = vrot.slane %v2426_v19, %v4160_v28 }
 0x608   : > { %v2442_v21 = vcombine.low %v2298_v51, %v2412_v50  ;;  %v2443_v25 = vcombine.high %v2298_v51, %v2412_v50  ;;  %v3685_v11 = vpop.f32.mrb[22].mxu1  ;;  %v2441_v9 = vrot.slane %v2427_v34, %v4160_v28 }
 0x609   : > { %v2415_v32 = vpop.f32.mrb[23].mxu1  ;;  %v2577_v43 = vrot.slane %v2570_v10, %v4160_v28  ;;  %v2502_v53 = vrot.slane %v2494_v40, %v4160_v28  ;;  %v2509_v58 = vrot.slane %v2495_v16, %v4160_v28  ;;  %v3782_v40 = vld [vmem:[%s4792_s4 + $0x28] sm:$0xff]  }
 0x60a   : > { %v2450_v48 = vrot.slane %v2442_v21, %v4160_v28  ;;  %v2457_v0 = vrot.slane %v2443_v25, %v4160_v28  ;;  %v2510_v8 = vcombine.low %v2301_v46, %v2415_v32  ;;  %v2511_v2 = vcombine.high %v2301_v46, %v2415_v32  ;;  %3696 = vmatprep.subr.bf16.mxu0 %v3782_v40 }
 0x60b   : > { %v2578_v45 = vcombine.low %v2569_v6, %v2577_v43  ;;  %3697 = vmatpush3.bf16.msra.mxu0 %v3782_v40 }
 0x60c   : > { %v2458_v61 = vcombine.low %v2434_v54, %v2450_v48  ;;  %v2459_v36 = vcombine.high %v2434_v54, %v2450_v48  ;;  %v2474_v15 = vcombine.low %v2441_v9, %v2457_v0  ;;  %v2475_v42 = vcombine.high %v2441_v9, %v2457_v0 }
 0x60d   : > { %v2518_v59 = vrot.slane %v2510_v8, %v4160_v28  ;;  %v2525_v62 = vrot.slane %v2511_v2, %v4160_v28  ;;  %v2721_v20 = vrot.slane %v2578_v45, %v4163_v35 }
 0x60e   : > { %v2466_v7 = vrot.slane %v2458_v61, %v4163_v35  ;;  %v2473_v13 = vrot.slane %v2459_v36, %v4163_v35  ;;  %v2482_v63 = vrot.slane %v2474_v15, %v4163_v35  ;;  %v2489_v57 = vrot.slane %v2475_v42, %v4163_v35 }
 0x60f   : > { %v2526_v3 = vcombine.low %v2502_v53, %v2518_v59  ;;  %v2527_v22 = vcombine.high %v2502_v53, %v2518_v59  ;;  %v2542_v14 = vcombine.low %v2509_v58, %v2525_v62  ;;  %v2543_v31 = vcombine.high %v2509_v58, %v2525_v62  ;;  %v3783_v53 = vld [vmem:[%s4792_s4 + $0x30] sm:$0xff]  }
 0x610   : > { %v2579_v23 = vcombine.low %v2466_v7, %v2473_v13  ;;  %v3472_v27 = vcombine.high %v2466_v7, %v2473_v13  ;;  %v2728_v18 = vrot.slane %v2721_v20, %v4160_v28  ;;  %v2595_v17 = vcombine.low %v2482_v63, %v2489_v57  ;;  %3698 = vmatprep.subr.bf16.mxu0 %v3783_v53 }
 0x611   : > { %v3473_v52 = vcombine.high %v2482_v63, %v2489_v57  ;;  %v2534_v55 = vrot.slane %v2526_v3, %v4163_v35  ;;  %v2541_v4 = vrot.slane %v2527_v22, %v4163_v35  ;;  %v2550_v1 = vrot.slane %v2542_v14, %v4163_v35  ;;  %3699 = vmatpush3.bf16.msra.mxu0 %v3783_v53 }
 0x612   : > { %v2586_v44 = vrot.slane %v2579_v23, %v4160_v28  ;;  %v2594_v56 = vrot.slane %v3472_v27, %v4160_v28  ;;  %v2557_v26 = vrot.slane %v2543_v31, %v4163_v35  ;;  %v2602_v30 = vrot.slane %v2595_v17, %v4160_v28 }
 0x613   : > { %v2610_v51 = vrot.slane %v3473_v52, %v4160_v28  ;;  %v2647_v33 = vcombine.low %v2534_v55, %v2541_v4  ;;  %v3474_v46 = vcombine.high %v2534_v55, %v2541_v4  ;;  %v2736_v60 = vrot.slane %v2728_v18, %v4163_v35 }
 0x614   : > { %v2663_v47 = vcombine.low %v2550_v1, %v2557_v26  ;;  %v3475_v12 = vcombine.high %v2550_v1, %v2557_v26  ;;  %v2729_v19 = vcombine.high %v2728_v18, %v3914_v49  ;;  %v2611_v5 = vcombine.low %v2586_v44, %v2594_v56 }
 0x615   : > { %v2654_v34 = vrot.slane %v2647_v33, %v4160_v28  ;;  %v2662_v38 = vrot.slane %v3474_v46, %v4160_v28  ;;  %v2627_v39 = vcombine.low %v2602_v30, %v2610_v51  ;;  %v2744_v10 = vcombine.high %v2736_v60, %v3914_v49 }
 0x616   : > { %v2670_v16 = vrot.slane %v2663_v47, %v4160_v28  ;;  %v2678_v50 = vrot.slane %v3475_v12, %v4160_v28  ;;  %v2743_v21 = vrot.slane %v2729_v19, %v4163_v35  ;;  %v2619_v25 = vrot.slane %v2611_v5, %v4163_v35 }
 0x617   : > { %v2635_v11 = vrot.slane %v2627_v39, %v4163_v35  ;;  %v2679_v6 = vcombine.low %v2654_v34, %v2662_v38  ;;  %v2612_v54 = vcombine.high %v2586_v44, %v2594_v56  ;;  %2753 = vrot.lane.b32.xlu0 %v2744_v10, %s3911_s24  ;;  %v2628_v43 = vcombine.high %v2602_v30, %v2610_v51 }
 0x618   : > { %2765 = vrot.lane.b32.xlu1 %v2743_v21, %s3909_s19  ;;  %v2745_v9 = vcombine.high %v2743_v21, %v3914_v49  ;;  %v2695_v32 = vcombine.low %v2670_v16, %v2678_v50  ;;  %v2680_v61 = vcombine.high %v2654_v34, %v2662_v38  ;;  %v2696_v36 = vcombine.high %v2670_v16, %v2678_v50  ;;  %v3784_v49 = vld [vmem:[%s4792_s4 + $0x38] sm:$0xff]   ;;  %v3897_v16 = vld [vmem:[%s3996_s26] sm:$0xff]  ;;  %v3898_v21 = vld [vmem:[%s3996_s26 + $0x8] sm:$0xff] }
 0x619   : > { %v2643_v28 = vcombine.low %v2619_v25, %v2635_v11  ;;  %v2644_v48 = vcombine.high %v2619_v25, %v2635_v11  ;;  %v2687_v0 = vrot.slane %v2679_v6, %v4163_v35  ;;  %v2626_v8 = vrot.slane %v2612_v54, %v4163_v35  ;;  %3700 = vmatprep.subr.bf16.mxu0 %v3784_v49  ;;  %v3899_v11 = vld [vmem:[%s3996_s26 + $0x10] sm:$0x1] }
 0x61a   : > { %v2703_v2 = vrot.slane %v2695_v32, %v4163_v35  ;;  %v2642_v45 = vrot.slane %v2628_v43, %v4163_v35  ;;  %v2694_v42 = vrot.slane %v2680_v61, %v4163_v35  ;;  %v2710_v59 = vrot.slane %v2696_v36, %v4163_v35  ;;  %3701 = vmatpush3.bf16.msra.mxu0 %v3784_v49  ;;  %v3787_v32 = vld [vmem:[%s4796_s8 + $0x4] ss:$8 sps:$4 sm:$0xff]   ;;  %v3790_v43 = vld [vmem:[%s4796_s8 + $0x14] ss:$8 sps:$4 sm:$0xff]  }
 0x61b   : > { %2777 = vrot.lane.b32.xlu0 %v2745_v9, %s3910_s20  ;;  %v3785_v9 = vld [vmem:[%s4796_s8] ss:$8 sps:$4 sm:$0xff]   ;;  %3082 = vmatprep.subr.bf16.mxu1 %v3787_v32  ;;  %v3815_v32 = vld [vmem:[%s4798_s10 + $0x58] sm:$0xff]  }
 0x61c   : > { %v2712_v15 = vcombine.high %v2687_v0, %v2703_v2  ;;  %v2711_v29 = vcombine.low %v2687_v0, %v2703_v2  ;;  %v2645_v58 = vcombine.low %v2626_v8, %v2642_v45  ;;  %v2646_v62 = vcombine.high %v2626_v8, %v2642_v45  ;;  %3083 = vmatpush1.bf16.msra.mxu1 %v3785_v9  ;;  %v3814_v9 = vld [vmem:[%s4798_s10 + $0x10] sm:$0xff]  }
 0x61d   : > { %v2713_v7 = vcombine.low %v2694_v42, %v2710_v59  ;;  %v2714_v13 = vcombine.high %v2694_v42, %v2710_v59  ;;  %3084 = vmatprep.subr.bf16.mxu1 %v3790_v43  ;;  %v3791_v59 = vld [vmem:[%s4796_s8 + $0x20] ss:$8 sps:$4 sm:$0xff]  }
 0x61e   : > { %v3730_v20 = vpack.i.bf16 %v2712_v15, %v2644_v48  ;;  %v3817_v43 = vld [vmem:[%s4798_s10 + $0x60] sm:$0xff]  }
 0x61f   : > { %v3735_v63 = vpack.i.bf16 %v2713_v7, %v2645_v58  ;;  %v3740_v57 = vpack.i.bf16 %v2714_v13, %v2646_v62  ;;  %v3793_v62 = vld [vmem:[%s4796_s8 + $0x24] ss:$8 sps:$4 sm:$0xff]   ;;  %v3794_v7 = vld [vmem:[%s4796_s8 + $0x30] ss:$8 sps:$4 sm:$0xff]  }
 0x620   : > { %3731 = vrot.lane.b32.xlu1 %v3730_v20, %s3911_s24  ;;  %v3796_v20 = vld [vmem:[%s4796_s8 + $0x34] ss:$8 sps:$4 sm:$0xff]   ;;  %v3799_v13 = vld [vmem:[%s4796_s8 + $0x44] ss:$8 sps:$4 sm:$0xff]  }
 0x624   : > { %3736 = vrot.lane.b32.xlu1 %v3735_v63, %s3909_s19  ;;  %v3797_v63 = vld [vmem:[%s4796_s8 + $0x40] ss:$8 sps:$4 sm:$0xff]  }
 0x628   : > { %3741 = vrot.lane.b32.xlu1 %v3740_v57, %s3910_s20  ;;  %v3802_v57 = vld [vmem:[%s4796_s8 + $0x54] ss:$8 sps:$4 sm:$0xff]   ;;  %s413_s20 = scalar_lea.vmem %s4800_s12, %s3714_s23 }
 0x689   : > { %v2754_v14 = vpop.permute.xlu0 %2753 }
 0x68a   : > { %v2766_v3 = vpop.permute.xlu1 %2765  ;;  %v2784_v35 = vsel %vm1805_vm1, %v2736_v60, %v2754_v14  ;;  %v3476_v60 = vld [vmem:[%s4793_s5] ss:$0 sm:$0xff] }
 0x68b   : > { %v2788_v52 = vsel %vm2785_vm4, %v2784_v35, %v2766_v3  ;;  %v3800_v3 = vld [vmem:[%s4796_s8 + $0x50] ss:$8 sps:$4 sm:$0xff]   ;;  %v3803_v14 = vld [vmem:[%s4796_s8 + $0x60] ss:$8 sps:$4 sm:$0xff]  }
 0x68c   : > { %v3809_v35 = vld [vmem:[%s4798_s10 + $0x40] sm:$0xff]  }
 0x68d   : > { %v2778_v17 = vpop.permute.xlu0 %2777  ;;  %3574 = vmatprep.subr.bf16.mxu0 %v3809_v35 }
 0x68e   : > { %v2792_v26 = vsel %vm2789_vm5, %v2788_v52, %v2778_v17 }
 0x68f   : > { %v2794_v12 = vpack.c.bf16 %v2792_v26, %v2792_v26 }
 0x692   : > { %v3732_v22 = vpop.permute.xlu1 %3731 }
 0x693   : > { %v3734_v27 = vunpack.i.h.bf16 %v3732_v22  ;;  %v3733_v31 = vunpack.i.l.bf16 %v3732_v22  ;;  %v3805_v22 = vld [vmem:[%s4796_s8 + $0x64] ss:$8 sps:$4 sm:$0xff]  }
 0x695   : > { %v2782_v4 = vsel %vm1805_vm1, %v2643_v28, %v3733_v31  ;;  %v2783_v44 = vsel %vm1805_vm1, %v2711_v29, %v3734_v27  ;;  %v3788_v28 = vld [vmem:[%s4796_s8 + $0x10] ss:$8 sps:$4 sm:$0xff]   ;;  %v3810_v27 = vld [vmem:[%s4798_s10] sm:$0xff]   ;;  %v3811_v31 = vld [vmem:[%s4798_s10 + $0x48] sm:$0xff]  }
 0x696   : > { %v3737_v23 = vpop.permute.xlu1 %3736  ;;  %3085 = vmatpush1.bf16.msra.mxu1 %v3788_v28  ;;  %v3818_v28 = vld [vmem:[%s4798_s10 + $0x20] sm:$0xff]  }
 0x697   : > { %v3739_v18 = vunpack.i.h.bf16 %v3737_v23  ;;  %v3738_v41 = vunpack.i.l.bf16 %v3737_v23  ;;  %3086 = vmatprep.subr.bf16.mxu1 %v3793_v62  ;;  %v3808_v23 = vld [vmem:[%s4796_s8 + $0x74] ss:$8 sps:$4 sm:$0xff]  }
 0x699   : > { %v2786_v30 = vsel %vm2785_vm4, %v2782_v4, %v3738_v41  ;;  %v2787_v51 = vsel %vm2785_vm4, %v2783_v44, %v3739_v18  ;;  %v3806_v18 = vld [vmem:[%s4796_s8 + $0x70] ss:$8 sps:$4 sm:$0xff]   ;;  %v3812_v41 = vld [vmem:[%s4798_s10 + $0x8] sm:$0xff]  }
 0x69a   : > { %v3742_v55 = vpop.permute.xlu1 %3741  ;;  %3087 = vmatpush1.bf16.msra.mxu1 %v3791_v59 }
 0x69b   : > { %v3744_v56 = vunpack.i.h.bf16 %v3742_v55  ;;  %v3743_v1 = vunpack.i.l.bf16 %v3742_v55  ;;  %3088 = vmatprep.subr.bf16.mxu1 %v3796_v20 }
 0x69d   : > { %v2790_v33 = vsel %vm2789_vm5, %v2786_v30, %v3743_v1  ;;  %v2791_v46 = vsel %vm2789_vm5, %v2787_v51, %v3744_v56 }
 0x69e   : > { %v2793_v47 = vpack.c.bf16 %v2791_v46, %v2790_v33  ;;  %3089 = vmatpush1.bf16.msra.mxu1 %v3794_v7  ;;  %v3485_v33 = vld [vmem:[%s4794_s6] ss:$0 sm:$0xff] }
 0x69f   : > { %3090 = vmatprep.subr.bf16.mxu1 %v3799_v13 }
 0x6a0   : > { %3702 = vmatprep.mubr.bf16.mxu0 %v2793_v47 }
 0x6a1   : > { %3703 = vmatmul.mubr.bf16.vlgmr.msra.gmra.mrb[20].mxu0 %v2794_v12 }
 0x6a2   : > { %3091 = vmatpush1.bf16.msra.mxu1 %v3797_v63  ;;  %3575 = vmatpush3.bf16.msra.mxu0 %v3810_v27 }
 0x6a3   : > { %3092 = vmatprep.subr.bf16.mxu1 %v3802_v57  ;;  %3576 = vmatprep.subr.bf16.mxu0 %v3811_v31 }
 0x6a6   : > { %3093 = vmatpush1.bf16.msra.mxu1 %v3800_v3  ;;  %3577 = vmatpush3.bf16.msra.mxu0 %v3812_v41 }
 0x6a7   : > { %3094 = vmatprep.subr.bf16.mxu1 %v3805_v22 }
 0x6aa   : > { %3095 = vmatpush1.bf16.msra.mxu1 %v3803_v14 }
 0x6ab   : > { %3096 = vmatprep.subr.bf16.mxu1 %v3808_v23 }
 0x6ae   : > { %3097 = vmatpush1.bf16.msra.mxu1 %v3806_v18 }
 0x774   : > { %v3704_v19 = vpop.f32.mrb[20].mxu0 }
 0x775   : > { %v2900_v34 = vpop.f32.mrb[21].mxu0  ;;  %v2909_v39 = vadd.f32 %v3704_v19, %v3476_v60  ;;  %v3486_v19 = vld [vmem:[%s4795_s7] ss:$0 sm:$0xff] }
 0x776   : > { %v2901_v38 = vadd.f32 %v3476_v60, %v2900_v34  ;;  %v3705_v5 = vpop.f32.mrb[22].mxu0 }
 0x777   : > { %v2903_v40 = vpop.f32.mrb[23].mxu0  ;;  %v4657_v6 = vadd.f32 %v3899_v11, %v2909_v39 }
 0x778   : > { %v4650_v50 = vadd.f32 %v3897_v16, %v2901_v38  ;;  %v2904_v10 = vadd.f32 %v3476_v60, %v2903_v40 }
 0x779   : > { %v2923_v54 = vsel %vm424_vm0, %v4657_v6, 0.0 }
 0x77a   : > { %v4653_v25 = vadd.f32 %v3898_v21, %v2904_v10  ;;  %2919 = vadd.xlane.f32.xlu1 %v4650_v50 }
 0x77c   : > { %2921 = vadd.xlane.f32.xlu0 %v4653_v25 }
 0x780   : > { %2924 = vadd.xlane.f32.xlu0 %v2923_v54  ;;  %v3813_v54 = vld [vmem:[%s4798_s10 + $0x50] sm:$0xff]  }
 0x781   : > { %3578 = vmatprep.subr.bf16.mxu0 %v3813_v54 }
 0x782   : > { %3579 = vmatpush3.bf16.msra.mxu0 %v3814_v9 }
 0x783   : > { %3580 = vmatprep.subr.bf16.mxu0 %v3815_v32 }
 0x807   : > { %v2920_v48 = vpop.xlane.xlu1 %2919 }
 0x808   : > { %v2926_v0 = vmul.f32 0.0078125, %v2920_v48  ;;  %v3819_v48 = vld [vmem:[%s4798_s10 + $0x68] sm:$0xff]  }
 0x809   : > { %v2922_v8 = vpop.xlane.xlu0 %2921 }
 0x80a   : > { %v2929_v53 = vsub.f32 %v4650_v50, %v2926_v0  ;;  %v2927_v2 = vmul.f32 0.0078125, %v2922_v8  ;;  %v3820_v0 = vld [vmem:[%s4798_s10 + $0x28] sm:$0xff]   ;;  %v3821_v8 = vld [vmem:[%s4798_s10 + $0x70] sm:$0xff]  }
 0x80c   : > { %v2930_v45 = vsub.f32 %v4653_v25, %v2927_v2  ;;  %v2932_v61 = vmul.f32 %v2929_v53, %v2929_v53  ;;  %v3823_v2 = vld [vmem:[%s4798_s10 + $0x78] sm:$0xff]  }
 0x80d   : > { %v2925_v36 = vpop.xlane.xlu0 %2924 }
 0x80e   : > { %v2928_v49 = vmul.f32 0.0078125, %v2925_v36  ;;  %2935 = vadd.xlane.f32.xlu0 %v2932_v61  ;;  %v2933_v15 = vmul.f32 %v2930_v45, %v2930_v45  ;;  %v2994_v61 = vsub.s32 0, %v4157_v24  ;;  %v2990_v36 = vld [vmem:[%s4797_s9] sm:$0x3] }
 0x810   : > { %v2931_v29 = vsub.f32 %v4657_v6, %v2928_v49  ;;  %2937 = vadd.xlane.f32.xlu1 %v2933_v15  ;;  %v2998_v49 = vsub.s32 1, %v4157_v24  ;;  %v2995_v15 = vrot.slane %v2990_v36, %v2994_v61 }
 0x812   : > { %v2934_v58 = vmul.f32 %v2931_v29, %v2931_v29 }
 0x814   : > { %v2939_v42 = vsel %vm424_vm0, %v2934_v58, 0.0 }
 0x815   : > { %2940 = vadd.xlane.f32.xlu0 %v2939_v42 }
 0x89b   : > { %v2936_v17 = vpop.xlane.xlu0 %2935 }
 0x89c   : > { %v2942_v52 = vmul.f32 0.0078125, %v2936_v17 }
 0x89d   : > { %v2938_v55 = vpop.xlane.xlu1 %2937 }
 0x89e   : > { %v2945_v4 = vadd.f32 1e-05, %v2942_v52  ;;  %v2943_v44 = vmul.f32 0.0078125, %v2938_v55 }
 0x8a0   : > { %3879 = vrsqrt.f32 %v2945_v4  ;;  %v2946_v56 = vadd.f32 1e-05, %v2943_v44 }
 0x8a2   : > { %3881 = vrsqrt.f32 %v2946_v56  ;;  %v2941_v1 = vpop.xlane.xlu0 %2940 }
 0x8a3   : > { %v2944_v26 = vmul.f32 0.0078125, %v2941_v1 }
 0x8a5   : > { %v2947_v30 = vadd.f32 1e-05, %v2944_v26 }
 0x8a7   : > { %3883 = vrsqrt.f32 %v2947_v30 }
 0x8aa   : > { %v3880_v51 = vpop.eup %3879 }
 0x8ab   : > { %v2951_v46 = vmul.f32 %v3880_v51, %v2929_v53  ;;  %v3822_v53 = vld [vmem:[%s4798_s10 + $0x30] sm:$0xff]  }
 0x8ac   : > { %v3882_v47 = vpop.eup %3881 }
 0x8ad   : > { %v2952_v12 = vmul.f32 %v3882_v47, %v2930_v45  ;;  %v2960_v60 = vmul.f32 %v3485_v33, %v2951_v46  ;;  %v3824_v45 = vld [vmem:[%s4798_s10 + $0x38] sm:$0xff]  }
 0x8af   : > { %v2961_v34 = vmul.f32 %v3485_v33, %v2952_v12  ;;  %v2969_v5 = vadd.f32 %v3486_v19, %v2960_v60 }
 0x8b1   : > { %v3884_v38 = vpop.eup %3883  ;;  %v2970_v39 = vadd.f32 %v3486_v19, %v2961_v34 }
 0x8b2   : > { %v2953_v40 = vmul.f32 %v3884_v38, %v2931_v29  ;;  %v2999_v29 = vrot.slane %v2990_v36, %v2998_v49 }
 0x8b3   : > { %v2972_v16 = vpack.c.bf16 %v2970_v39, %v2969_v5 }
 0x8b4   : > { %v2962_v10 = vmul.f32 %v3485_v33, %v2953_v40 }
 0x8b5   : > { %3115 = vmatmul.mubr.bf16.vlgmr.msra.gmra.mrb[24].mxu1 %v2972_v16 }
 0x8b6   : > { %3124 = vmatprep.mubr.bf16.mxu1 %v3908_v37  ;;  %v2971_v21 = vadd.f32 %v3486_v19, %v2962_v10  ;;  %v3816_v37 = vld [vmem:[%s4798_s10 + $0x18] sm:$0xff]  }
 0x8b7   : > { %3581 = vmatpush3.bf16.msra.mxu0 %v3816_v37 }
 0x8b8   : > { %v2973_v11 = vpack.c.bf16 %v2971_v21, %v2971_v21  ;;  %3582 = vmatprep.subr.bf16.mxu0 %v3817_v43 }
 0x8bb   : > { %3583 = vmatpush3.bf16.msra.mxu0 %v3818_v28  ;;  %v3503_v28 = vld [vmem:[%s4799_s11] ss:$0 sm:$0xff] }
 0x8bc   : > { %3584 = vmatprep.subr.bf16.mxu0 %v3819_v48 }
 0x8bd   : > { %3125 = vmatmul.mubr.bf16.gmra.mrb[28].mxu1 %v2973_v11 }
 0x8bf   : > { %3585 = vmatpush3.bf16.msra.mxu0 %v3820_v0 }
 0x8c0   : > { %3586 = vmatprep.subr.bf16.mxu0 %v3821_v8 }
 0x8c3   : > { %3587 = vmatpush3.bf16.msra.mxu0 %v3822_v53 }
 0x8c4   : > { %3588 = vmatprep.subr.bf16.mxu0 %v3823_v2 }
 0x8c7   : > { %3589 = vmatpush3.bf16.msra.mxu0 %v3824_v45 }
 0x988   : > { %v3116_v58 = vpop.f32.mrb[24].mxu1 }
 0x989   : > { %v3117_v42 = vadd.f32 %v3116_v58, %v2995_v15  ;;  %v3118_v59 = vpop.f32.mrb[25].mxu1 }
 0x98a   : > { %v3119_v62 = vadd.f32 %v3118_v59, %v2999_v29  ;;  %v3120_v20 = vpop.f32.mrb[26].mxu1 }
 0x98b   : > { %v3139_v7 = vmul.f32 0.70710677, %v3117_v42  ;;  %v3121_v13 = vadd.f32 %v3120_v20, %v2995_v15  ;;  %v3122_v63 = vpop.f32.mrb[27].mxu1  ;;  %v3133_v26 = vmul.f32 0.5, %v3117_v42 }
 0x98c   : > { %v3140_v57 = vmul.f32 0.70710677, %v3119_v62  ;;  %v3123_v3 = vadd.f32 %v3122_v63, %v2999_v29  ;;  %v3134_v33 = vmul.f32 0.5, %v3119_v62 }
 0x98d   : > { %3885 = verf.f32 %v3139_v7  ;;  %v3141_v22 = vmul.f32 0.70710677, %v3121_v13  ;;  %v3135_v30 = vmul.f32 0.5, %v3121_v13 }
 0x98e   : > { %3887 = verf.f32 %v3140_v57  ;;  %v3142_v14 = vmul.f32 0.70710677, %v3123_v3  ;;  %v3136_v46 = vmul.f32 0.5, %v3123_v3 }
 0x98f   : > { %3889 = verf.f32 %v3141_v22 }
 0x990   : > { %3891 = verf.f32 %v3142_v14  ;;  %v3126_v23 = vpop.f32.mrb[28].mxu1 }
 0x991   : > { %v3127_v24 = vadd.f32 %v3126_v23, %v2995_v15  ;;  %v3128_v35 = vpop.f32.mrb[29].mxu1 }
 0x992   : > { %v3129_v27 = vadd.f32 %v3128_v35, %v2999_v29  ;;  %v3130_v31 = vpop.f32.mrb[30].mxu1 }
 0x993   : > { %v3143_v18 = vmul.f32 0.70710677, %v3127_v24  ;;  %v3131_v41 = vpop.f32.mrb[31].mxu1  ;;  %v3137_v11 = vmul.f32 0.5, %v3127_v24 }
 0x994   : > { %v3144_v17 = vmul.f32 0.70710677, %v3129_v27  ;;  %v3138_v10 = vmul.f32 0.5, %v3129_v27 }
 0x995   : > { %3893 = verf.f32 %v3143_v18 }
 0x996   : > { %3895 = verf.f32 %v3144_v17 }
 0x997   : > { %v3886_v52 = vpop.eup %3885 }
 0x998   : > { %v3888_v55 = vpop.eup %3887  ;;  %v3151_v4 = vadd.f32 1.0, %v3886_v52 }
 0x999   : > { %v3890_v44 = vpop.eup %3889  ;;  %v3152_v56 = vadd.f32 1.0, %v3888_v55 }
 0x99a   : > { %v3892_v1 = vpop.eup %3891  ;;  %v3153_v51 = vadd.f32 1.0, %v3890_v44  ;;  %v3157_v12 = vmul.f32 %v3151_v4, %v3133_v26 }
 0x99b   : > { %v3154_v47 = vadd.f32 1.0, %v3892_v1  ;;  %v3158_v19 = vmul.f32 %v3152_v56, %v3134_v33 }
 0x99c   : > { %v3159_v60 = vmul.f32 %v3153_v51, %v3135_v30 }
 0x99d   : > { %v3160_v34 = vmul.f32 %v3154_v47, %v3136_v46 }
 0x99e   : > { %v3163_v38 = vpack.c.bf16 %v3159_v60, %v3157_v12 }
 0x99f   : > { %v3894_v5 = vpop.eup %3893  ;;  %v3164_v39 = vpack.c.bf16 %v3160_v34, %v3158_v19 }
 0x9a0   : > { %v3896_v40 = vpop.eup %3895  ;;  %v3155_v16 = vadd.f32 1.0, %v3894_v5 }
 0x9a1   : > { %v3156_v21 = vadd.f32 1.0, %v3896_v40  ;;  %3334 = vmatprep.mubr.bf16.mxu0 %v3164_v39 }
 0x9a2   : > { %3335 = vmatmul.mubr.bf16.vlgmr.msra.gmra.mrb[24].mxu0 %v3163_v38  ;;  %v3161_v9 = vmul.f32 %v3155_v16, %v3137_v11 }
 0x9a3   : > { %v3162_v54 = vmul.f32 %v3156_v21, %v3138_v10 }
 0x9a4   : > { %v3165_v37 = vpack.c.bf16 %v3161_v9, %v3161_v9 }
 0x9a5   : > { %v3166_v32 = vpack.c.bf16 %v3162_v54, %v3162_v54 }
 0x9a7   : > { %3342 = vmatprep.mubr.bf16.mxu0 %v3166_v32 }
 0x9aa   : > { %3343 = vmatmul.mubr.bf16.gmra.mrb[28].mxu0 %v3165_v37 }
 0xa75   : > { %v3590_v43 = vpop.f32.mrb[24].mxu0 }
 0xa76   : > { %v3591_v48 = vpop.f32.mrb[25].mxu0 }
 0xa77   : > { %v3592_v0 = vadd.f32 %v3591_v48, %v3590_v43  ;;  %v3593_v8 = vpop.f32.mrb[26].mxu0 }
 0xa78   : > { %v3594_v53 = vpop.f32.mrb[27].mxu0 }
 0xa79   : > { %v3337_v2 = vadd.f32 %v3592_v0, %v3503_v28  ;;  %v3595_v45 = vadd.f32 %v3594_v53, %v3593_v8 }
 0xa7b   : > { %v3350_v61 = vadd.f32 %v3337_v2, %v4650_v50  ;;  %v3340_v36 = vadd.f32 %v3595_v45, %v3503_v28 }
 0xa7d   : > { %3353 = vst [vmem:[%s413_s20] sm:$0xff] %v3350_v61  ;;  %v3351_v49 = vadd.f32 %v3340_v36, %v4653_v25  ;;  %v3596_v15 = vpop.f32.mrb[28].mxu0 }
 0xa7e   : > { %v3597_v29 = vpop.f32.mrb[29].mxu0 }
 0xa7f   : > { %3354 = vst [vmem:[%s413_s20 + $0x8] sm:$0xff] %v3351_v49  ;;  %v3598_v58 = vadd.f32 %v3597_v29, %v3596_v15  ;;  %v3599_v42 = vpop.f32.mrb[30].mxu0 }
 0xa80   : > { %v3600_v59 = vpop.f32.mrb[31].mxu0 }
 0xa81   : > { %v3345_v62 = vadd.f32 %v3598_v58, %v3503_v28 }
 0xa83   : > { %v3352_v20 = vadd.f32 %v3345_v62, %v4657_v6 }
 0xa85   : > { %3355 = vst [vmem:[%s413_s20 + $0x10] sm:$0x1] %v3352_v20 }
 0xa86 PF: > { %s22_s21 = sadd.s32 1, %s3906_s21  }
 0xa87   : > { %p19_p4 = scmp.ge.s32.totalorder %s22_s21, 4  }
 0xa89   :  { %21 = sbr.rel (!%p19_p4) target bundleno = 1 (0x1), region = 98 }

</bundles_post_ra>
